<compile_context>
chip_gen: v7x
topology: tpu7x:2x2x1
jax: 0.10.0
libtpu: 0.0.40
codegen_flags: <defaults>
</compile_context>

<pallas_src>
import functools

import jax
import jax.numpy as jnp
from jax.experimental import pallas as pl
from jax.experimental.pallas import tpu as pltpu


# ----------------------------------------------------------------------------
# Kernel 1: fused FOV head + separable bilinear grid_sample (whole batch)
# ----------------------------------------------------------------------------
def _fov_grid_sample_kernel(x_ref, fw_ref, fb_ref, o_ref, *, C, H, W):
    """x_ref:  (B, C*H, W) image, rows channel-major (row r = (c, y)).
    fw_ref: (C, 4) FOV linear weight.   fb_ref: (1, 4) FOV bias.
    o_ref:  (B, C*H, W) bf16 bilinearly resampled image (same row layout).
    """
    B = x_ref.shape[0]
    Hout, Wout = H, W
    x2 = x_ref[...].astype(jnp.float32)                                # (B, C*H, W)

    # --- FOV head: per-channel mean pool -> Linear(C,4) -> tanh / sigmoid ---
    s_w = jnp.sum(x2, axis=2)                                          # (B, C*H)
    r_i = jax.lax.broadcasted_iota(jnp.int32, (C * H, C), 0).astype(jnp.float32)
    c_i = jax.lax.broadcasted_iota(jnp.int32, (C * H, C), 1).astype(jnp.float32)
    sel = jnp.where(jnp.floor(r_i / H) == c_i, 1.0, 0.0)               # (C*H, C)
    pooled = jnp.dot(s_w, sel, preferred_element_type=jnp.float32) * (1.0 / (H * W))
    fov = (jnp.dot(pooled, fw_ref[...].astype(jnp.float32),
                   preferred_element_type=jnp.float32)
           + fb_ref[...].astype(jnp.float32))                          # (B, 4)
    off_y = jnp.reshape(jnp.tanh(fov[:, 0:1]) * 0.25, (B, 1, 1))
    off_x = jnp.reshape(jnp.tanh(fov[:, 1:2]) * 0.25, (B, 1, 1))
    sc_y = jnp.reshape(1.0 / (1.0 + jnp.exp(-fov[:, 2:3])), (B, 1, 1))
    sc_x = jnp.reshape(1.0 / (1.0 + jnp.exp(-fov[:, 3:4])), (B, 1, 1))

    # --- column interpolation matrices Cx[b, w, j], pre-transposed (W, Wout) ---
    w_i = jax.lax.broadcasted_iota(jnp.int32, (1, W, Wout), 1).astype(jnp.float32)
    j_i = jax.lax.broadcasted_iota(jnp.int32, (1, W, Wout), 2).astype(jnp.float32)
    gx = off_x + sc_x * (2.0 * j_i / max(Wout - 1, 1) - 1.0)           # (B, W, Wout)
    sx = (gx + 1.0) * 0.5 * (W - 1)                                    # source column
    x0 = jnp.floor(sx)
    fx = sx - x0
    x0_ok = (x0 >= 0.0) & (x0 <= W - 1.0)
    x1_ok = (x0 + 1.0 >= 0.0) & (x0 + 1.0 <= W - 1.0)
    cx = (jnp.where((w_i == x0) & x0_ok, 1.0 - fx, 0.0)
          + jnp.where((w_i == x0 + 1.0) & x1_ok, fx, 0.0))             # (B, W, Wout)

    # --- row interpolation matrices Ry[b, i, y], channel-shared (Hout, H) ---
    i_i = jax.lax.broadcasted_iota(jnp.int32, (1, Hout, H), 1).astype(jnp.float32)
    y_i = jax.lax.broadcasted_iota(jnp.int32, (1, Hout, H), 2).astype(jnp.float32)
    gy = off_y + sc_y * (2.0 * i_i / max(Hout - 1, 1) - 1.0)           # (B, Hout, H)
    sy = (gy + 1.0) * 0.5 * (H - 1)                                    # source row
    y0 = jnp.floor(sy)
    fy = sy - y0
    y0_ok = (y0 >= 0.0) & (y0 <= H - 1.0)
    y1_ok = (y0 + 1.0 >= 0.0) & (y0 + 1.0 <= H - 1.0)
    ry = (jnp.where((y_i == y0) & y0_ok, 1.0 - fy, 0.0)
          + jnp.where((y_i == y0 + 1.0) & y1_ok, fy, 0.0))             # (B, Hout, H)

    # --- separable bilinear sampling: batched column matmul, per-channel rows ---
    col = jnp.einsum('brw,bwj->brj', x2, cx,
                     preferred_element_type=jnp.float32)               # (B, C*H, Wout)
    for c in range(C):   # static loop: channel-shared (Hout,H) row interp per channel
        out_c = jnp.einsum('biy,byw->biw', ry, col[:, c * H:(c + 1) * H, :],
                           preferred_element_type=jnp.float32)         # (B, Hout, Wout)
        o_ref[:, c * Hout:(c + 1) * Hout, :] = out_c.astype(o_ref.dtype)


def fov_grid_sample(x, fov_w, fov_b):
    """x: (B, C, H, W) f32 -> FOV-driven bilinear resample, (B, C, H, W) bf16."""
    B, C, H, W = x.shape
    x2d = x.reshape(B, C * H, W)                      # free row-major reshape
    kernel = functools.partial(_fov_grid_sample_kernel, C=C, H=H, W=W)
    out = pl.pallas_call(
        kernel,
        out_shape=jax.ShapeDtypeStruct((B, C * H, W), jnp.bfloat16),
        grid=(1,),
        in_specs=[
            pl.BlockSpec((B, C * H, W), lambda i: (0, 0, 0)),
            pl.BlockSpec((C, 4), lambda i: (0, 0)),
            pl.BlockSpec((1, 4), lambda i: (0, 0)),
        ],
        out_specs=pl.BlockSpec((B, C * H, W), lambda i: (0, 0, 0)),
    )(x2d, fov_w, fov_b.reshape(1, 4))
    return out.reshape(B, C, H, W)


# ----------------------------------------------------------------------------
# Kernel 2: backbone stand-in MLP (lane-padded, N1-split parallel, K-streamed)
# ----------------------------------------------------------------------------
def _round_up(n, m):
    return ((n + m - 1) // m) * m


def _choose_k_tile(feat, n1_half, budget_bytes=8 * 1024 * 1024):
    """Largest K tile whose double-buffered bf16 w1 tile fits the budget;
    prefers a single K tile (kt=1) when possible."""
    def tile_bytes(tk):
        return 2 * tk * n1_half * 2          # double-buffered, bf16
    if tile_bytes(feat) <= budget_bytes:
        return feat
    for cand in range(feat - feat % 128, 0, -128):
        if feat % cand == 0 and tile_bytes(cand) <= budget_bytes:
            return cand
    return feat  # no 128-aligned divisor fits: single tile


def _mlp_kernel(x_ref, w1_ref, b1_ref, w2_ref, o_ref, h_ref):
    k = pl.program_id(1)

    @pl.when(k == 0)
    def _():
        h_ref[...] = jnp.zeros_like(h_ref)

    # bf16 MXU operands (activations already bf16), f32 accumulation in VMEM.
    h_ref[...] += jnp.dot(x_ref[...], w1_ref[...],
                          preferred_element_type=jnp.float32)

    @pl.when(k == pl.num_programs(1) - 1)
    def _():
        h = jnp.maximum(h_ref[...] + b1_ref[...].astype(jnp.float32), 0.0)
        o_ref[0] = jnp.dot(h.astype(jnp.bfloat16), w2_ref[...],
                           preferred_element_type=jnp.float32)


def mlp(x, w1p, b1p, w2p, b2p, out_dim, n_splits=2):
    """x: (B, feat) bf16.  w1p (feat, N1p) bf16, b1p (N1p,) f32, w2p (N1p, N2p)
    bf16, b2p (N2p,) f32 are lane-padded.  Returns (B, out_dim) f32."""
    B, F = x.shape
    N1p, N2p = w1p.shape[1], w2p.shape[1]
    assert N1p % n_splits == 0
    n1h = N1p // n_splits
    tk = _choose_k_tile(F, n1h)
    kt = max(F // tk, 1)

    # Tight VMEM limit from actual (double-buffered) tile sizes + headroom.
    tiles = (2 * B * tk * x.dtype.itemsize      # x tile
             + 2 * tk * n1h * 2                 # w1 tile (bf16)
             + 2 * n1h * 4                      # b1 half (f32)
             + 2 * n1h * N2p * 2                # w2 half (bf16)
             + 2 * B * N2p * 4                  # output block (f32)
             + B * n1h * 4)                     # accumulator scratch
    vmem_limit = min(32 * 1024 * 1024, max(4 * 1024 * 1024, int(tiles * 1.5)))

    partials = pl.pallas_call(
        _mlp_kernel,
        out_shape=jax.ShapeDtypeStruct((n_splits, B, N2p), jnp.float32),
        grid=(n_splits, kt),
        in_specs=[
            pl.BlockSpec((B, tk), lambda n, k: (0, k)),      # activations, K-streamed
            pl.BlockSpec((tk, n1h), lambda n, k: (k, n)),    # w1 tile (K, N1-half)
            pl.BlockSpec((1, n1h), lambda n, k: (0, n)),     # b1 half
            pl.BlockSpec((n1h, N2p), lambda n, k: (n, 0)),   # w2 rows for this half
        ],
        out_specs=pl.BlockSpec((1, B, N2p), lambda n, k: (n, 0, 0)),
        scratch_shapes=[pltpu.VMEM((B, n1h), jnp.float32)],
        compiler_params=pltpu.CompilerParams(
            dimension_semantics=("parallel", "arbitrary"),
            vmem_limit_bytes=vmem_limit),
    )(x, w1p, b1p.reshape(1, N1p), w2p)

    out = jnp.sum(partials, axis=0) + b2p.reshape(1, N2p)    # tiny XLA combine
    return out[:, :out_dim]


# ----------------------------------------------------------------------------
# Net forward + params
# ----------------------------------------------------------------------------
def init_params(C, H, W, key):
    k1, k2, k3, k4, k5, k6 = jax.random.split(key, 6)
    feat = C * H * W
    n1, n2 = 1000, 200
    n1p = _round_up(n1, 256)   # 1024: halves of 512 lanes
    n2p = _round_up(n2, 128)   # 256
    w1 = (jax.random.normal(k3, (feat, n1), jnp.float32)
          * (1.0 / jnp.sqrt(feat))).astype(jnp.bfloat16)
    b1 = jax.random.normal(k4, (n1,), jnp.float32) * 0.01
    w2 = (jax.random.normal(k5, (n1, n2), jnp.float32)
          * (1.0 / jnp.sqrt(1000.0))).astype(jnp.bfloat16)
    b2 = jax.random.normal(k6, (n2,), jnp.float32) * 0.01
    return {
        # FOV head: pooled (B, C) -> (B, 4) = [off_y, off_x, scale_y, scale_x]
        "fov_w": jax.random.normal(k1, (C, 4), jnp.float32) * 0.5,
        "fov_b": jax.random.normal(k2, (4,), jnp.float32) * 0.1,
        # Backbone stand-in weights: bf16 MXU operands, lane-padded offline
        # (zero padding does not change the math; output is sliced back to 200).
        "w1": jnp.pad(w1, ((0, 0), (0, n1p - n1))),
        "b1": jnp.pad(b1, ((0, n1p - n1),)),
        "w2": jnp.pad(w2, ((0, n1p - n1), (0, n2p - n2))),
        "b2": jnp.pad(b2, ((0, n2p - n2),)),
    }


def net_forward(x, params):
    B, C, H, W = x.shape
    # FOV head + reference grid + bilinear grid_sample: one fused Pallas kernel.
    x_ = fov_grid_sample(x, params["fov_w"], params["fov_b"])       # (B,C,H,W) bf16
    # Res stand-in: flatten -> Linear(feat,1000) -> ReLU -> Linear(1000,200).
    feat = x_.reshape(B, C * H * W)                                  # metadata-only
    return mlp(feat, params["w1"], params["b1"], params["w2"], params["b2"],
               out_dim=200)


if __name__ == "__main__":
    B, C, H, W = 2, 3, 16, 16
    key = jax.random.PRNGKey(0)
    kx, kp = jax.random.split(key)
    x = jax.random.normal(kx, (B, C, H, W), jnp.float32)
    params = init_params(C, H, W, kp)

    out = jax.jit(net_forward)(x, params)
    out = jax.block_until_ready(out)

    assert out.shape == (B, 200), out.shape
    assert bool(jnp.all(jnp.isfinite(out)))
    print("KERNEL_OK")
</pallas_src>

<mosaic_0001>
module attributes {stable_mosaic.version = 11 : i64} {
  func.func @_mlp_kernel(%arg0: i32, %arg1: i32, %arg2: memref<2x768xbf16, #tpu.memory_space<vmem>>, %arg3: memref<768x512xbf16, #tpu.memory_space<vmem>>, %arg4: memref<1x512xf32, #tpu.memory_space<vmem>>, %arg5: memref<512x256xbf16, #tpu.memory_space<vmem>>, %arg6: memref<1x2x256xf32, #tpu.memory_space<vmem>>, %arg7: memref<2x512xf32, #tpu.memory_space<vmem>>) attributes {dimension_semantics = [#tpu.dimension_semantics<parallel>, #tpu.dimension_semantics<arbitrary>], iteration_bounds = array<i64: 2, 1>, scalar_prefetch = 0 : i64, scratch_operands = 1 : i64, tpu.core_type = #tpu.core_type<tc>, window_params = [{transform_indices = @transform_0, window_bounds = array<i64: 2, 768>}, {transform_indices = @transform_1, window_bounds = array<i64: 768, 512>}, {transform_indices = @transform_2, window_bounds = array<i64: 1, 512>}, {transform_indices = @transform_3, window_bounds = array<i64: 512, 256>}, {transform_indices = @transform_4, window_bounds = array<i64: 1, 2, 256>}]} {
    %c0_i32 = arith.constant 0 : i32
    %0 = arith.cmpi eq, %arg1, %c0_i32 : i32
    %1 = arith.extui %0 : i1 to i32
    %c0_i32_0 = arith.constant 0 : i32
    %2 = arith.cmpi ne, %1, %c0_i32_0 : i32
    scf.if %2 {
      %cst_10 = arith.constant 0.000000e+00 : f32
      %12 = vector.broadcast %cst_10 : f32 to vector<2x512xf32>
      %c0_11 = arith.constant 0 : index
      %c0_12 = arith.constant 0 : index
      %13 = vector.load %arg7[%c0_11, %c0_12] : memref<2x512xf32, #tpu.memory_space<vmem>>, vector<2x512xf32>
      tpu.vector_store %arg7[%c0_11, %c0_12], %12 {strides = array<i32>} : memref<2x512xf32, #tpu.memory_space<vmem>>, vector<2x512xf32>,
    } else {
    }
    %c0 = arith.constant 0 : index
    %c0_1 = arith.constant 0 : index
    %3 = vector.load %arg7[%c0, %c0_1] : memref<2x512xf32, #tpu.memory_space<vmem>>, vector<2x512xf32>
    %c0_2 = arith.constant 0 : index
    %c0_3 = arith.constant 0 : index
    %4 = vector.load %arg2[%c0_2, %c0_3] : memref<2x768xbf16, #tpu.memory_space<vmem>>, vector<2x768xbf16>
    %c0_4 = arith.constant 0 : index
    %c0_5 = arith.constant 0 : index
    %5 = vector.load %arg3[%c0_4, %c0_5] : memref<768x512xbf16, #tpu.memory_space<vmem>>, vector<768x512xbf16>
    %cst = arith.constant dense<0.000000e+00> : vector<2x512xf32>
    %6 = tpu.matmul %4, %5, %cst {dimension_numbers = #tpu.dot_dimension_numbers<[1], [0], [0], [1], [0, 0, 1, 1], [], []>} : vector<2x768xbf16>, vector<768x512xbf16>, vector<2x512xf32> -> vector<2x512xf32>
    %7 = arith.addf %3, %6 : vector<2x512xf32>
    %c0_6 = arith.constant 0 : index
    %c0_7 = arith.constant 0 : index
    %8 = vector.load %arg7[%c0_6, %c0_7] : memref<2x512xf32, #tpu.memory_space<vmem>>, vector<2x512xf32>
    tpu.vector_store %arg7[%c0_6, %c0_7], %7 {strides = array<i32>} : memref<2x512xf32, #tpu.memory_space<vmem>>, vector<2x512xf32>,
    %c0_i32_8 = arith.constant 0 : i32
    %9 = arith.cmpi eq, %arg1, %c0_i32_8 : i32
    %10 = arith.extui %9 : i1 to i32
    %c0_i32_9 = arith.constant 0 : i32
    %11 = arith.cmpi ne, %10, %c0_i32_9 : i32
    scf.if %11 {
      %c0_10 = arith.constant 0 : index
      %c0_11 = arith.constant 0 : index
      %12 = vector.load %arg7[%c0_10, %c0_11] : memref<2x512xf32, #tpu.memory_space<vmem>>, vector<2x512xf32>
      %c0_12 = arith.constant 0 : index
      %c0_13 = arith.constant 0 : index
      %13 = vector.load %arg4[%c0_12, %c0_13] : memref<1x512xf32, #tpu.memory_space<vmem>>, vector<1x512xf32>
      %14 = vector.broadcast %13 : vector<1x512xf32> to vector<2x512xf32>
      %15 = arith.addf %12, %14 : vector<2x512xf32>
      %cst_14 = arith.constant 0.000000e+00 : f32
      %16 = vector.broadcast %cst_14 : f32 to vector<2x512xf32>
      %17 = arith.maximumf %15, %16 : vector<2x512xf32>
      %18 = arith.truncf %17 : vector<2x512xf32> to vector<2x512xbf16>
      %c0_15 = arith.constant 0 : index
      %c0_16 = arith.constant 0 : index
      %19 = vector.load %arg5[%c0_15, %c0_16] : memref<512x256xbf16, #tpu.memory_space<vmem>>, vector<512x256xbf16>
      %cst_17 = arith.constant dense<0.000000e+00> : vector<2x256xf32>
      %20 = tpu.matmul %18, %19, %cst_17 {dimension_numbers = #tpu.dot_dimension_numbers<[1], [0], [0], [1], [0, 0, 1, 1], [], []>} : vector<2x512xbf16>, vector<512x256xbf16>, vector<2x256xf32> -> vector<2x256xf32>
      %c0_18 = arith.constant 0 : index
      %c0_19 = arith.constant 0 : index
      %c0_20 = arith.constant 0 : index
      %21 = vector.load %arg6[%c0_18, %c0_19, %c0_20] : memref<1x2x256xf32, #tpu.memory_space<vmem>>, vector<1x2x256xf32>
      %22 = vector.shape_cast %21 : vector<1x2x256xf32> to vector<2x256xf32>
      %23 = vector.shape_cast %20 : vector<2x256xf32> to vector<1x2x256xf32>
      tpu.vector_store %arg6[%c0_18, %c0_19, %c0_20], %23 {strides = array<i32>} : memref<1x2x256xf32, #tpu.memory_space<vmem>>, vector<1x2x256xf32>,
    } else {
    }
    return
  }
  func.func @transform_0(%arg0: i32, %arg1: i32) -> (i32, i32) {
    %c0_i32 = arith.constant 0 : i32
    %c0_i32_0 = arith.constant 0 : i32
    return %c0_i32, %arg1 : i32, i32
  }
  func.func @transform_1(%arg0: i32, %arg1: i32) -> (i32, i32) {
    %c0_i32 = arith.constant 0 : i32
    return %arg1, %arg0 : i32, i32
  }
  func.func @transform_2(%arg0: i32, %arg1: i32) -> (i32, i32) {
    %c0_i32 = arith.constant 0 : i32
    %c0_i32_0 = arith.constant 0 : i32
    return %c0_i32, %arg0 : i32, i32
  }
  func.func @transform_3(%arg0: i32, %arg1: i32) -> (i32, i32) {
    %c0_i32 = arith.constant 0 : i32
    %c0_i32_0 = arith.constant 0 : i32
    return %arg0, %c0_i32 : i32, i32
  }
  func.func @transform_4(%arg0: i32, %arg1: i32) -> (i32, i32, i32) {
    %c0_i32 = arith.constant 0 : i32
    %c0_i32_0 = arith.constant 0 : i32
    %c0_i32_1 = arith.constant 0 : i32
    return %arg0, %c0_i32, %c0_i32_0 : i32, i32, i32
  }
}

module attributes {stable_mosaic.version = 11 : i64} {
  func.func @_fov_grid_sample_kernel(%arg0: i32, %arg1: memref<2x48x16xf32, #tpu.memory_space<vmem>>, %arg2: memref<3x4xf32, #tpu.memory_space<vmem>>, %arg3: memref<1x4xf32, #tpu.memory_space<vmem>>, %arg4: memref<2x48x16xbf16, #tpu.memory_space<vmem>>) attributes {dimension_semantics = [#tpu.dimension_semantics<arbitrary>], iteration_bounds = array<i64: 1>, scalar_prefetch = 0 : i64, scratch_operands = 0 : i64, tpu.core_type = #tpu.core_type<tc>, window_params = [{pipeline_mode = #tpu.pipeline_mode<synchronous>, transform_indices = @transform_0, window_bounds = array<i64: 2, 48, 16>}, {pipeline_mode = #tpu.pipeline_mode<synchronous>, transform_indices = @transform_1, window_bounds = array<i64: 3, 4>}, {pipeline_mode = #tpu.pipeline_mode<synchronous>, transform_indices = @transform_2, window_bounds = array<i64: 1, 4>}, {pipeline_mode = #tpu.pipeline_mode<synchronous>, transform_indices = @transform_3, window_bounds = array<i64: 2, 48, 16>}]} {
    %c0 = arith.constant 0 : index
    %c0_0 = arith.constant 0 : index
    %c0_1 = arith.constant 0 : index
    %0 = vector.load %arg1[%c0, %c0_0, %c0_1] : memref<2x48x16xf32, #tpu.memory_space<vmem>>, vector<2x48x16xf32>
    %cst = arith.constant dense<0.000000e+00> : vector<2x48xf32>
    %1 = vector.multi_reduction <add>, %0, %cst [2] : vector<2x48x16xf32> to vector<2x48xf32>
    %2 = tpu.iota {dimensions = array<i32: 0>} : vector<48x3xi32>
    %3 = arith.sitofp %2 : vector<48x3xi32> to vector<48x3xf32>
    %4 = tpu.iota {dimensions = array<i32: 1>} : vector<48x3xi32>
    %5 = arith.sitofp %4 : vector<48x3xi32> to vector<48x3xf32>
    %cst_2 = arith.constant 1.600000e+01 : f32
    %6 = vector.broadcast %cst_2 : f32 to vector<48x3xf32>
    %7 = arith.divf %3, %6 : vector<48x3xf32>
    %8 = math.floor %7 : vector<48x3xf32>
    %9 = arith.cmpf oeq, %8, %5 : vector<48x3xf32>
    %cst_3 = arith.constant 1.000000e+00 : f32
    %cst_4 = arith.constant 0.000000e+00 : f32
    %10 = vector.broadcast %cst_3 : f32 to vector<48x3xf32>
    %11 = vector.broadcast %cst_4 : f32 to vector<48x3xf32>
    %12 = arith.select %9, %10, %11 : vector<48x3xi1>, vector<48x3xf32>
    %cst_5 = arith.constant dense<0.000000e+00> : vector<2x3xf32>
    %13 = tpu.matmul %1, %12, %cst_5 {dimension_numbers = #tpu.dot_dimension_numbers<[1], [0], [0], [1], [0, 0, 1, 1], [], []>} : vector<2x48xf32>, vector<48x3xf32>, vector<2x3xf32> -> vector<2x3xf32>
    %cst_6 = arith.constant 3.906250e-03 : f32
    %14 = vector.broadcast %cst_6 : f32 to vector<2x3xf32>
    %15 = arith.mulf %13, %14 : vector<2x3xf32>
    %c0_7 = arith.constant 0 : index
    %c0_8 = arith.constant 0 : index
    %16 = vector.load %arg2[%c0_7, %c0_8] : memref<3x4xf32, #tpu.memory_space<vmem>>, vector<3x4xf32>
    %cst_9 = arith.constant dense<0.000000e+00> : vector<2x4xf32>
    %17 = tpu.matmul %15, %16, %cst_9 {dimension_numbers = #tpu.dot_dimension_numbers<[1], [0], [0], [1], [0, 0, 1, 1], [], []>} : vector<2x3xf32>, vector<3x4xf32>, vector<2x4xf32> -> vector<2x4xf32>
    %c0_10 = arith.constant 0 : index
    %c0_11 = arith.constant 0 : index
    %18 = vector.load %arg3[%c0_10, %c0_11] : memref<1x4xf32, #tpu.memory_space<vmem>>, vector<1x4xf32>
    %19 = vector.broadcast %18 : vector<1x4xf32> to vector<2x4xf32>
    %20 = arith.addf %17, %19 : vector<2x4xf32>
    %21 = vector.extract_strided_slice %20 {offsets = [0, 0], sizes = [2, 1], strides = [1, 1]} : vector<2x4xf32> to vector<2x1xf32>
    %22 = math.tanh %21 : vector<2x1xf32>
    %cst_12 = arith.constant 2.500000e-01 : f32
    %23 = vector.broadcast %cst_12 : f32 to vector<2x1xf32>
    %24 = arith.mulf %22, %23 : vector<2x1xf32>
    %25 = vector.shape_cast %24 : vector<2x1xf32> to vector<2x1x1xf32>
    %26 = vector.extract_strided_slice %20 {offsets = [0, 1], sizes = [2, 1], strides = [1, 1]} : vector<2x4xf32> to vector<2x1xf32>
    %27 = math.tanh %26 : vector<2x1xf32>
    %cst_13 = arith.constant 2.500000e-01 : f32
    %28 = vector.broadcast %cst_13 : f32 to vector<2x1xf32>
    %29 = arith.mulf %27, %28 : vector<2x1xf32>
    %30 = vector.shape_cast %29 : vector<2x1xf32> to vector<2x1x1xf32>
    %31 = vector.extract_strided_slice %20 {offsets = [0, 2], sizes = [2, 1], strides = [1, 1]} : vector<2x4xf32> to vector<2x1xf32>
    %cst_14 = arith.constant 0.000000e+00 : f32
    %32 = vector.broadcast %cst_14 : f32 to vector<2x1xf32>
    %33 = arith.subf %32, %31 : vector<2x1xf32>
    %34 = math.exp %33 : vector<2x1xf32>
    %cst_15 = arith.constant 1.000000e+00 : f32
    %35 = vector.broadcast %cst_15 : f32 to vector<2x1xf32>
    %36 = arith.addf %35, %34 : vector<2x1xf32>
    %cst_16 = arith.constant 1.000000e+00 : f32
    %37 = vector.broadcast %cst_16 : f32 to vector<2x1xf32>
    %38 = arith.divf %37, %36 : vector<2x1xf32>
    %39 = vector.shape_cast %38 : vector<2x1xf32> to vector<2x1x1xf32>
    %40 = vector.extract_strided_slice %20 {offsets = [0, 3], sizes = [2, 1], strides = [1, 1]} : vector<2x4xf32> to vector<2x1xf32>
    %cst_17 = arith.constant 0.000000e+00 : f32
    %41 = vector.broadcast %cst_17 : f32 to vector<2x1xf32>
    %42 = arith.subf %41, %40 : vector<2x1xf32>
    %43 = math.exp %42 : vector<2x1xf32>
    %cst_18 = arith.constant 1.000000e+00 : f32
    %44 = vector.broadcast %cst_18 : f32 to vector<2x1xf32>
    %45 = arith.addf %44, %43 : vector<2x1xf32>
    %cst_19 = arith.constant 1.000000e+00 : f32
    %46 = vector.broadcast %cst_19 : f32 to vector<2x1xf32>
    %47 = arith.divf %46, %45 : vector<2x1xf32>
    %48 = vector.shape_cast %47 : vector<2x1xf32> to vector<2x1x1xf32>
    %49 = tpu.iota {dimensions = array<i32: 1>} : vector<1x16x16xi32>
    %50 = arith.sitofp %49 : vector<1x16x16xi32> to vector<1x16x16xf32>
    %51 = tpu.iota {dimensions = array<i32: 2>} : vector<1x16x16xi32>
    %52 = arith.sitofp %51 : vector<1x16x16xi32> to vector<1x16x16xf32>
    %cst_20 = arith.constant 2.000000e+00 : f32
    %53 = vector.broadcast %cst_20 : f32 to vector<1x16x16xf32>
    %54 = arith.mulf %53, %52 : vector<1x16x16xf32>
    %cst_21 = arith.constant 1.500000e+01 : f32
    %55 = vector.broadcast %cst_21 : f32 to vector<1x16x16xf32>
    %56 = arith.divf %54, %55 : vector<1x16x16xf32>
    %cst_22 = arith.constant 1.000000e+00 : f32
    %57 = vector.broadcast %cst_22 : f32 to vector<1x16x16xf32>
    %58 = arith.subf %56, %57 : vector<1x16x16xf32>
    %59 = vector.broadcast %48 : vector<2x1x1xf32> to vector<2x16x16xf32>
    %60 = vector.broadcast %58 : vector<1x16x16xf32> to vector<2x16x16xf32>
    %61 = arith.mulf %59, %60 : vector<2x16x16xf32>
    %62 = vector.broadcast %30 : vector<2x1x1xf32> to vector<2x16x16xf32>
    %63 = arith.addf %62, %61 : vector<2x16x16xf32>
    %cst_23 = arith.constant 1.000000e+00 : f32
    %64 = vector.broadcast %cst_23 : f32 to vector<2x16x16xf32>
    %65 = arith.addf %63, %64 : vector<2x16x16xf32>
    %cst_24 = arith.constant 5.000000e-01 : f32
    %66 = vector.broadcast %cst_24 : f32 to vector<2x16x16xf32>
    %67 = arith.mulf %65, %66 : vector<2x16x16xf32>
    %cst_25 = arith.constant 1.500000e+01 : f32
    %68 = vector.broadcast %cst_25 : f32 to vector<2x16x16xf32>
    %69 = arith.mulf %67, %68 : vector<2x16x16xf32>
    %70 = math.floor %69 : vector<2x16x16xf32>
    %71 = arith.subf %69, %70 : vector<2x16x16xf32>
    %cst_26 = arith.constant 0.000000e+00 : f32
    %72 = vector.broadcast %cst_26 : f32 to vector<2x16x16xf32>
    %73 = arith.cmpf oge, %70, %72 : vector<2x16x16xf32>
    %cst_27 = arith.constant 1.500000e+01 : f32
    %74 = vector.broadcast %cst_27 : f32 to vector<2x16x16xf32>
    %75 = arith.cmpf ole, %70, %74 : vector<2x16x16xf32>
    %76 = arith.andi %73, %75 : vector<2x16x16xi1>
    %cst_28 = arith.constant 1.000000e+00 : f32
    %77 = vector.broadcast %cst_28 : f32 to vector<2x16x16xf32>
    %78 = arith.addf %70, %77 : vector<2x16x16xf32>
    %cst_29 = arith.constant 0.000000e+00 : f32
    %79 = vector.broadcast %cst_29 : f32 to vector<2x16x16xf32>
    %80 = arith.cmpf oge, %78, %79 : vector<2x16x16xf32>
    %cst_30 = arith.constant 1.000000e+00 : f32
    %81 = vector.broadcast %cst_30 : f32 to vector<2x16x16xf32>
    %82 = arith.addf %70, %81 : vector<2x16x16xf32>
    %cst_31 = arith.constant 1.500000e+01 : f32
    %83 = vector.broadcast %cst_31 : f32 to vector<2x16x16xf32>
    %84 = arith.cmpf ole, %82, %83 : vector<2x16x16xf32>
    %85 = arith.andi %80, %84 : vector<2x16x16xi1>
    %86 = vector.broadcast %50 : vector<1x16x16xf32> to vector<2x16x16xf32>
    %87 = arith.cmpf oeq, %86, %70 : vector<2x16x16xf32>
    %88 = arith.andi %87, %76 : vector<2x16x16xi1>
    %cst_32 = arith.constant 1.000000e+00 : f32
    %89 = vector.broadcast %cst_32 : f32 to vector<2x16x16xf32>
    %90 = arith.subf %89, %71 : vector<2x16x16xf32>
    %cst_33 = arith.constant 0.000000e+00 : f32
    %91 = vector.broadcast %cst_33 : f32 to vector<2x16x16xf32>
    %92 = arith.select %88, %90, %91 : vector<2x16x16xi1>, vector<2x16x16xf32>
    %cst_34 = arith.constant 1.000000e+00 : f32
    %93 = vector.broadcast %cst_34 : f32 to vector<2x16x16xf32>
    %94 = arith.addf %70, %93 : vector<2x16x16xf32>
    %95 = vector.broadcast %50 : vector<1x16x16xf32> to vector<2x16x16xf32>
    %96 = arith.cmpf oeq, %95, %94 : vector<2x16x16xf32>
    %97 = arith.andi %96, %85 : vector<2x16x16xi1>
    %cst_35 = arith.constant 0.000000e+00 : f32
    %98 = vector.broadcast %cst_35 : f32 to vector<2x16x16xf32>
    %99 = arith.select %97, %71, %98 : vector<2x16x16xi1>, vector<2x16x16xf32>
    %100 = arith.addf %92, %99 : vector<2x16x16xf32>
    %101 = tpu.iota {dimensions = array<i32: 1>} : vector<1x16x16xi32>
    %102 = arith.sitofp %101 : vector<1x16x16xi32> to vector<1x16x16xf32>
    %103 = tpu.iota {dimensions = array<i32: 2>} : vector<1x16x16xi32>
    %104 = arith.sitofp %103 : vector<1x16x16xi32> to vector<1x16x16xf32>
    %cst_36 = arith.constant 2.000000e+00 : f32
    %105 = vector.broadcast %cst_36 : f32 to vector<1x16x16xf32>
    %106 = arith.mulf %105, %102 : vector<1x16x16xf32>
    %cst_37 = arith.constant 1.500000e+01 : f32
    %107 = vector.broadcast %cst_37 : f32 to vector<1x16x16xf32>
    %108 = arith.divf %106, %107 : vector<1x16x16xf32>
    %cst_38 = arith.constant 1.000000e+00 : f32
    %109 = vector.broadcast %cst_38 : f32 to vector<1x16x16xf32>
    %110 = arith.subf %108, %109 : vector<1x16x16xf32>
    %111 = vector.broadcast %39 : vector<2x1x1xf32> to vector<2x16x16xf32>
    %112 = vector.broadcast %110 : vector<1x16x16xf32> to vector<2x16x16xf32>
    %113 = arith.mulf %111, %112 : vector<2x16x16xf32>
    %114 = vector.broadcast %25 : vector<2x1x1xf32> to vector<2x16x16xf32>
    %115 = arith.addf %114, %113 : vector<2x16x16xf32>
    %cst_39 = arith.constant 1.000000e+00 : f32
    %116 = vector.broadcast %cst_39 : f32 to vector<2x16x16xf32>
    %117 = arith.addf %115, %116 : vector<2x16x16xf32>
    %cst_40 = arith.constant 5.000000e-01 : f32
    %118 = vector.broadcast %cst_40 : f32 to vector<2x16x16xf32>
    %119 = arith.mulf %117, %118 : vector<2x16x16xf32>
    %cst_41 = arith.constant 1.500000e+01 : f32
    %120 = vector.broadcast %cst_41 : f32 to vector<2x16x16xf32>
    %121 = arith.mulf %119, %120 : vector<2x16x16xf32>
    %122 = math.floor %121 : vector<2x16x16xf32>
    %123 = arith.subf %121, %122 : vector<2x16x16xf32>
    %cst_42 = arith.constant 0.000000e+00 : f32
    %124 = vector.broadcast %cst_42 : f32 to vector<2x16x16xf32>
    %125 = arith.cmpf oge, %122, %124 : vector<2x16x16xf32>
    %cst_43 = arith.constant 1.500000e+01 : f32
    %126 = vector.broadcast %cst_43 : f32 to vector<2x16x16xf32>
    %127 = arith.cmpf ole, %122, %126 : vector<2x16x16xf32>
    %128 = arith.andi %125, %127 : vector<2x16x16xi1>
    %cst_44 = arith.constant 1.000000e+00 : f32
    %129 = vector.broadcast %cst_44 : f32 to vector<2x16x16xf32>
    %130 = arith.addf %122, %129 : vector<2x16x16xf32>
    %cst_45 = arith.constant 0.000000e+00 : f32
    %131 = vector.broadcast %cst_45 : f32 to vector<2x16x16xf32>
    %132 = arith.cmpf oge, %130, %131 : vector<2x16x16xf32>
    %cst_46 = arith.constant 1.000000e+00 : f32
    %133 = vector.broadcast %cst_46 : f32 to vector<2x16x16xf32>
    %134 = arith.addf %122, %133 : vector<2x16x16xf32>
    %cst_47 = arith.constant 1.500000e+01 : f32
    %135 = vector.broadcast %cst_47 : f32 to vector<2x16x16xf32>
    %136 = arith.cmpf ole, %134, %135 : vector<2x16x16xf32>
    %137 = arith.andi %132, %136 : vector<2x16x16xi1>
    %138 = vector.broadcast %104 : vector<1x16x16xf32> to vector<2x16x16xf32>
    %139 = arith.cmpf oeq, %138, %122 : vector<2x16x16xf32>
    %140 = arith.andi %139, %128 : vector<2x16x16xi1>
    %cst_48 = arith.constant 1.000000e+00 : f32
    %141 = vector.broadcast %cst_48 : f32 to vector<2x16x16xf32>
    %142 = arith.subf %141, %123 : vector<2x16x16xf32>
    %cst_49 = arith.constant 0.000000e+00 : f32
    %143 = vector.broadcast %cst_49 : f32 to vector<2x16x16xf32>
    %144 = arith.select %140, %142, %143 : vector<2x16x16xi1>, vector<2x16x16xf32>
    %cst_50 = arith.constant 1.000000e+00 : f32
    %145 = vector.broadcast %cst_50 : f32 to vector<2x16x16xf32>
    %146 = arith.addf %122, %145 : vector<2x16x16xf32>
    %147 = vector.broadcast %104 : vector<1x16x16xf32> to vector<2x16x16xf32>
    %148 = arith.cmpf oeq, %147, %146 : vector<2x16x16xf32>
    %149 = arith.andi %148, %137 : vector<2x16x16xi1>
    %cst_51 = arith.constant 0.000000e+00 : f32
    %150 = vector.broadcast %cst_51 : f32 to vector<2x16x16xf32>
    %151 = arith.select %149, %123, %150 : vector<2x16x16xi1>, vector<2x16x16xf32>
    %152 = arith.addf %144, %151 : vector<2x16x16xf32>
    "tpu.trace_start"() <{level = 10 : i32, message = "brw,bwj->brj"}> : () -> ()
    %cst_52 = arith.constant dense<0.000000e+00> : vector<2x48x16xf32>
    %153 = tpu.matmul %0, %100, %cst_52 {dimension_numbers = #tpu.dot_dimension_numbers<[2], [1], [1], [2], [0, 0, 0, 1, 1, 2], [0], [0]>} : vector<2x48x16xf32>, vector<2x16x16xf32>, vector<2x48x16xf32> -> vector<2x48x16xf32>
    "tpu.trace_stop"() : () -> ()
    %154 = vector.extract_strided_slice %153 {offsets = [0, 0, 0], sizes = [2, 16, 16], strides = [1, 1, 1]} : vector<2x48x16xf32> to vector<2x16x16xf32>
    "tpu.trace_start"() <{level = 10 : i32, message = "biy,byw->biw"}> : () -> ()
    %cst_53 = arith.constant dense<0.000000e+00> : vector<2x16x16xf32>
    %155 = tpu.matmul %152, %154, %cst_53 {dimension_numbers = #tpu.dot_dimension_numbers<[2], [1], [1], [2], [0, 0, 0, 1, 1, 2], [0], [0]>} : vector<2x16x16xf32>, vector<2x16x16xf32>, vector<2x16x16xf32> -> vector<2x16x16xf32>
    "tpu.trace_stop"() : () -> ()
    %156 = arith.truncf %155 : vector<2x16x16xf32> to vector<2x16x16xbf16>
    %c0_54 = arith.constant 0 : index
    %c0_55 = arith.constant 0 : index
    %c0_56 = arith.constant 0 : index
    %157 = vector.load %arg4[%c0_54, %c0_55, %c0_56] : memref<2x48x16xbf16, #tpu.memory_space<vmem>>, vector<2x16x16xbf16>
    tpu.vector_store %arg4[%c0_54, %c0_55, %c0_56], %156 {strides = array<i32>} : memref<2x48x16xbf16, #tpu.memory_space<vmem>>, vector<2x16x16xbf16>,
    %158 = vector.extract_strided_slice %153 {offsets = [0, 16, 0], sizes = [2, 16, 16], strides = [1, 1, 1]} : vector<2x48x16xf32> to vector<2x16x16xf32>
    "tpu.trace_start"() <{level = 10 : i32, message = "biy,byw->biw"}> : () -> ()
    %cst_57 = arith.constant dense<0.000000e+00> : vector<2x16x16xf32>
    %159 = tpu.matmul %152, %158, %cst_57 {dimension_numbers = #tpu.dot_dimension_numbers<[2], [1], [1], [2], [0, 0, 0, 1, 1, 2], [0], [0]>} : vector<2x16x16xf32>, vector<2x16x16xf32>, vector<2x16x16xf32> -> vector<2x16x16xf32>
    "tpu.trace_stop"() : () -> ()
    %160 = arith.truncf %159 : vector<2x16x16xf32> to vector<2x16x16xbf16>
    %c0_58 = arith.constant 0 : index
    %c16 = arith.constant 16 : index
    %c0_59 = arith.constant 0 : index
    %161 = vector.load %arg4[%c0_58, %c16, %c0_59] : memref<2x48x16xbf16, #tpu.memory_space<vmem>>, vector<2x16x16xbf16>
    tpu.vector_store %arg4[%c0_58, %c16, %c0_59], %160 {strides = array<i32>} : memref<2x48x16xbf16, #tpu.memory_space<vmem>>, vector<2x16x16xbf16>,
    %162 = vector.extract_strided_slice %153 {offsets = [0, 32, 0], sizes = [2, 16, 16], strides = [1, 1, 1]} : vector<2x48x16xf32> to vector<2x16x16xf32>
    "tpu.trace_start"() <{level = 10 : i32, message = "biy,byw->biw"}> : () -> ()
    %cst_60 = arith.constant dense<0.000000e+00> : vector<2x16x16xf32>
    %163 = tpu.matmul %152, %162, %cst_60 {dimension_numbers = #tpu.dot_dimension_numbers<[2], [1], [1], [2], [0, 0, 0, 1, 1, 2], [0], [0]>} : vector<2x16x16xf32>, vector<2x16x16xf32>, vector<2x16x16xf32> -> vector<2x16x16xf32>
    "tpu.trace_stop"() : () -> ()
    %164 = arith.truncf %163 : vector<2x16x16xf32> to vector<2x16x16xbf16>
    %c0_61 = arith.constant 0 : index
    %c32 = arith.constant 32 : index
    %c0_62 = arith.constant 0 : index
    %165 = vector.load %arg4[%c0_61, %c32, %c0_62] : memref<2x48x16xbf16, #tpu.memory_space<vmem>>, vector<2x16x16xbf16>
    tpu.vector_store %arg4[%c0_61, %c32, %c0_62], %164 {strides = array<i32>} : memref<2x48x16xbf16, #tpu.memory_space<vmem>>, vector<2x16x16xbf16>,
    return
  }
  func.func @transform_0(%arg0: i32) -> (i32, i32, i32) {
    %c0_i32 = arith.constant 0 : i32
    %c0_i32_0 = arith.constant 0 : i32
    %c0_i32_1 = arith.constant 0 : i32
    %c0_i32_2 = arith.constant 0 : i32
    return %c0_i32, %c0_i32_0, %c0_i32_1 : i32, i32, i32
  }
  func.func @transform_1(%arg0: i32) -> (i32, i32) {
    %c0_i32 = arith.constant 0 : i32
    %c0_i32_0 = arith.constant 0 : i32
    %c0_i32_1 = arith.constant 0 : i32
    return %c0_i32, %c0_i32_0 : i32, i32
  }
  func.func @transform_2(%arg0: i32) -> (i32, i32) {
    %c0_i32 = arith.constant 0 : i32
    %c0_i32_0 = arith.constant 0 : i32
    %c0_i32_1 = arith.constant 0 : i32
    return %c0_i32, %c0_i32_0 : i32, i32
  }
  func.func @transform_3(%arg0: i32) -> (i32, i32, i32) {
    %c0_i32 = arith.constant 0 : i32
    %c0_i32_0 = arith.constant 0 : i32
    %c0_i32_1 = arith.constant 0 : i32
    %c0_i32_2 = arith.constant 0 : i32
    return %c0_i32, %c0_i32_0, %c0_i32_1 : i32, i32, i32
  }
}

</mosaic_0001>

<bundles_post_ra>
// kernel: net_forward.2
= control target key start
LH: loop header
LB: loop body
LE: loop exit
PB: predicated region body
PF: predicated region fallthrough
CT: control target
= control target key end

     0   :  { %8 = vsyncpa [#allocation3], 0  ;;  %s2036_s0 = inlined_call_operand.hbm [shape: f32[2,48,16], index: 0, kind: input, shape index: {}]   ;;  %s2037_s1 = inlined_call_operand.hbm [shape: f32[3,4], index: 1, kind: input, shape index: {}]   ;;  %s2038_s2 = inlined_call_operand.hbm [shape: f32[1,4], index: 2, kind: input, shape index: {}]   ;;  %s2039_s3 = inlined_call_operand.vmem [shape: bf16[2,48,16], index: 3, kind: output, shape index: {}]  }
   0x1   :  { %9 = vsyncpa [#allocation5], 0  ;;  %s1734_s12 = smov [#allocation4]   ;;  %s1735_s14 = smov [#allocation2]  }
   0x2   :  { %s28_s13 = sshll.u32 %s1734_s12, 4  ;;  %s15_s15 = sshll.u32 %s1735_s14, 4  ;;  %s29_s13 = int_to_ptr.vmem [resolvable:$true] %s28_s13  ;;  %s1768_s15 = int_to_ptr.vmem [resolvable:$true] %s15_s15 }
   0x3   :  { %s1664_s18 = scalar_lea.hbm %s2037_s1, 64 }
   0x4   :  { %p1665_p0 = scmp.ne.s32.totalorder %s2037_s1, %s1664_s18  ;;  %p1668_p1 = scmp.lt.u32.totalorder %s1664_s18, %s2037_s1 }
   0x6   :  { %p1670_p2 = pnand %p1668_p1, %p1665_p0 }
   0x8   :  { %1673 = shalt.err (!%p1670_p2)
}
   0x9   :  { %s1674_s23 = scalar_lea.vmem %s29_s13, 64  ;;  %p1679_p4 = scmp.lt.s32.totalorder %s29_s13, %s29_s13 }
   0xa   :  { %p1675_p3 = scmp.ne.s32.totalorder %s29_s13, %s1674_s23  ;;  %p1680_p5 = scmp.lt.s32.totalorder %s1674_s23, %s1674_s23 }
   0xc   :  { %p1681_p6 = por %p1680_p5, %p1679_p4 }
   0xe   :  { %p1682_p7 = pnand %p1681_p6, %p1675_p3 }
  0x10   :  { %1685 = shalt.err (!%p1682_p7)
}
  0x11   :  { %31 = dma.hbm_to_vmem [thread:$0]  %s2037_s1, 64, %s29_s13, [#allocation5]  }
  0x12   :  { %s1686_s28 = scalar_lea.hbm %s2036_s0, 1536 }
  0x13   :  { %p1687_p8 = scmp.ne.s32.totalorder %s2036_s0, %s1686_s28  ;;  %p1690_p9 = scmp.lt.u32.totalorder %s1686_s28, %s2036_s0 }
  0x15   :  { %p1692_p10 = pnand %p1690_p9, %p1687_p8 }
  0x17   :  { %1695 = shalt.err (!%p1692_p10)
}
  0x18   :  { %s1696_s6 = scalar_lea.vmem %s1768_s15, 1536  ;;  %p1701_p12 = scmp.lt.s32.totalorder %s1768_s15, %s1768_s15 }
  0x19   :  { %p1697_p11 = scmp.ne.s32.totalorder %s1768_s15, %s1696_s6  ;;  %p1702_p13 = scmp.lt.s32.totalorder %s1696_s6, %s1696_s6 }
  0x1b   :  { %p1703_p0 = por %p1702_p13, %p1701_p12 }
  0x1d   :  { %p1704_p1 = pnand %p1703_p0, %p1697_p11 }
  0x1f   :  { %1707 = shalt.err (!%p1704_p1)
}
  0x20   :  { %s1736_s1 = smov 128   ;;  %s1737_s7 = smov 8  }
  0x21   :  { %21 = dma.hbm_to_vmem [thread:$0]  %s2036_s0, 1536, %s1768_s15, [#allocation3], %s1736_s1, %s1736_s1, %s1737_s7  }
  0x22   :  { %s1738_s10 = smov [#allocation6]   ;;  %s1708_s14 = scalar_lea.hbm %s2038_s2, 16 }
  0x23   :  { %s38_s11 = sshll.u32 %s1738_s10, 4  ;;  %p1709_p2 = scmp.ne.s32.totalorder %s2038_s2, %s1708_s14  ;;  %s39_s11 = int_to_ptr.vmem [resolvable:$true] %s38_s11 }
  0x24   :  { %p1712_p3 = scmp.lt.u32.totalorder %s1708_s14, %s2038_s2 }
  0x26   :  { %p1714_p4 = pnand %p1712_p3, %p1709_p2 }
  0x28   :  { %1717 = shalt.err (!%p1714_p4)
}
  0x29   :  { %s1718_s20 = scalar_lea.vmem %s39_s11, 16  ;;  %s1722_s0 = scalar_lea.vmem %s39_s11, 32 }
  0x2a   :  { %p1719_p5 = scmp.ne.s32.totalorder %s39_s11, %s1718_s20  ;;  %p1723_p6 = scmp.lt.s32.totalorder %s39_s11, %s39_s11 }
  0x2b   :  { %p1724_p7 = scmp.lt.s32.totalorder %s1722_s0, %s1718_s20 }
  0x2d   :  { %p1725_p8 = por %p1724_p7, %p1723_p6 }
  0x2f   :  { %p1726_p9 = pnand %p1725_p8, %p1719_p5 }
  0x31   :  { %1729 = shalt.err (!%p1726_p9)
}
  0x32   :  { %41 = dma.hbm_to_vmem [thread:$0]  %s2038_s2, 16, %s39_s11, [#allocation5]  }
  0x33   :  { %1730 = dma.done.wait [#allocation3], 1536  }
  0x34   :  { %1731 = vsyncadd [#allocation3], 4294965760 }
  0x35   :  { %1732 = dma.done.wait [#allocation5], 80  }
  0x36   :  { %1733 = vsyncadd [#allocation5], 4294967216  ;;  %vm63_vm0 = vcmask 130048   ;;  %v1811_v0 = vld [vmem:[#allocation2 + $0x30] sm:$0xff]  ;;  %v1813_v1 = vld [vmem:[#allocation2] sm:$0xff]  ;;  %v100_v18 = vlaneseq  ;;  %v1739_v40 = vmov 0.0|0.0  }
  0x37   :  { %v1815_v2 = vld [vmem:[#allocation2 + $0x38] sm:$0xff]  ;;  %v82_v3 = vsel %vm63_vm0, %v1811_v0, 0.0  ;;  %v64_v4 = vsel %vm63_vm0, %v1813_v1, 0.0  ;;  %v1821_v5 = vld [vmem:[#allocation2 + $0x8] sm:$0xff]  ;;  %v1827_v8 = vld [vmem:[#allocation2 + $0x40] sm:$0xff]  ;;  %1594 = vmatprep.subr.bf16.mxu0 %v1739_v40  ;;  %vm1741_vm10 = vmmov 0  }
  0x38   :  { %83 = vadd.xlane.f32.xlu1 %v82_v3  ;;  %65 = vadd.xlane.f32.xlu0 %v64_v4  ;;  %v85_v6 = vsel %vm63_vm0, %v1815_v2, 0.0  ;;  %v67_v7 = vsel %vm63_vm0, %v1821_v5, 0.0  ;;  %v1829_v9 = vld [vmem:[#allocation2 + $0x10] sm:$0xff]  ;;  %v88_v10 = vsel %vm63_vm0, %v1827_v8, 0.0  ;;  %v1835_v12 = vld [vmem:[#allocation2 + $0x48] sm:$0xff]  ;;  %v1837_v13 = vld [vmem:[#allocation2 + $0x18] sm:$0xff] }
  0x39   :  { %v70_v11 = vsel %vm63_vm0, %v1829_v9, 0.0  ;;  %v91_v14 = vsel %vm63_vm0, %v1835_v12, 0.0  ;;  %v73_v15 = vsel %vm63_vm0, %v1837_v13, 0.0  ;;  %v1843_v16 = vld [vmem:[#allocation2 + $0x50] sm:$0xff]  ;;  %v1845_v17 = vld [vmem:[#allocation2 + $0x20] sm:$0xff]  ;;  %v1851_v21 = vld [vmem:[#allocation2 + $0x58] sm:$0xff] }
  0x3a   :  { %v94_v19 = vsel %vm63_vm0, %v1843_v16, 0.0  ;;  %v76_v20 = vsel %vm63_vm0, %v1845_v17, 0.0  ;;  %v1853_v22 = vld [vmem:[#allocation2 + $0x28] sm:$0xff]  ;;  %v1855_v23 = vshrl.u32 %v100_v18, 7  ;;  %v97_v24 = vsel %vm63_vm0, %v1851_v21, 0.0 }
  0x3b   :  { %v79_v25 = vsel %vm63_vm0, %v1853_v22, 0.0  ;;  %v1862_v27 = vand.u32 127, %v100_v18  ;;  %v1740_v43 = vmov 1.0|1.0   ;;  %v1742_v53 = vmov 0.0  }
  0x3c   :  { %86 = vadd.xlane.f32.xlu1 %v85_v6  ;;  %68 = vadd.xlane.f32.xlu0 %v67_v7  ;;  %v102_v26 = vadd.s32 8, %v1855_v23  ;;  %v1865_v28 = vcvt.s32.f32 %v1855_v23  ;;  %v103_v33 = vadd.s32 16, %v1855_v23  ;;  %v104_v34 = vadd.s32 24, %v1855_v23 }
  0x3d   :  { %v1870_v30 = vcvt.s32.f32 %v1862_v27  ;;  %v105_v42 = vadd.s32 32, %v1855_v23  ;;  %v106_v45 = vadd.s32 40, %v1855_v23  ;;  %1518 = vmatprep.mubr.msk.f32.mxu0 %vm1741_vm10, %v1742_v53  ;;  %1521 = vmatprep.subr.mxu1 %v1742_v53  ;;  %v157_v58 = vadd.s32 4294967288, %v1862_v27 }
  0x3e   :  { %v1867_v29 = vcvt.s32.f32 %v102_v26  ;;  %v117_v31 = vmul.f32 0.0625, %v1865_v28  ;;  %v109_v37 = vcvt.s32.f32 %v103_v33  ;;  %v110_v38 = vcvt.s32.f32 %v104_v34  ;;  %1523 = vmatprep.mubr.msk.f32.mxu1 %vm1741_vm10, %v1742_v53 }
  0x3f   :  { %v111_v47 = vcvt.s32.f32 %v105_v42  ;;  %v112_v48 = vcvt.s32.f32 %v106_v45  ;;  %v164_v59 = vadd.s32 4294967280, %v1862_v27  ;;  %v171_v62 = vadd.s32 4294967272, %v1862_v27 }
  0x40   :  { %89 = vadd.xlane.f32.xlu1 %v88_v10  ;;  %71 = vadd.xlane.f32.xlu0 %v70_v11  ;;  %v118_v32 = vmul.f32 0.0625, %v1867_v29  ;;  %v123_v35 = vfloor.f32 %v117_v31  ;;  %v119_v39 = vmul.f32 0.0625, %v109_v37  ;;  %v120_v41 = vmul.f32 0.0625, %v110_v38 }
  0x41   :  { %v121_v49 = vmul.f32 0.0625, %v111_v47  ;;  %v122_v50 = vmul.f32 0.0625, %v112_v48  ;;  %v178_v63 = vadd.s32 4294967264, %v1862_v27  ;;  %v160_v3 = vsub.s32 %v157_v58, %v1855_v23  ;;  %v1403_v58 = vld [vmem:[#allocation6] ss:$0 sm:$0xff] }
  0x42   :  { %v124_v36 = vfloor.f32 %v118_v32  ;;  %vm129_vm1 = vcmp.eq.f32.partialorder %v123_v35, %v1870_v30  ;;  %v125_v44 = vfloor.f32 %v119_v39  ;;  %v126_v46 = vfloor.f32 %v120_v41 }
  0x43   :  { %v127_v51 = vfloor.f32 %v121_v49  ;;  %v128_v52 = vfloor.f32 %v122_v50  ;;  %v167_v4 = vsub.s32 %v164_v59, %v1855_v23  ;;  %v185_v10 = vadd.s32 4294967256, %v1862_v27 }
  0x44   :  { %92 = vadd.xlane.f32.xlu1 %v91_v14  ;;  %74 = vadd.xlane.f32.xlu0 %v73_v15  ;;  %vm130_vm2 = vcmp.eq.f32.partialorder %v124_v36, %v1870_v30  ;;  %vm131_vm4 = vcmp.eq.f32.partialorder %v125_v44, %v1870_v30  ;;  %vm132_vm5 = vcmp.eq.f32.partialorder %v126_v46, %v1870_v30  ;;  %vm162_vm11 = vcmask 130112  }
  0x45   :  { %vm1595_vm3 = vmpackc.low %vm130_vm2, %vm129_vm1  ;;  %vm133_vm7 = vcmp.eq.f32.partialorder %v127_v51, %v1870_v30  ;;  %vm134_vm8 = vcmp.eq.f32.partialorder %v128_v52, %v1870_v30  ;;  %v155_v11 = vsub.s32 %v1862_v27, %v1855_v23  ;;  %v174_v14 = vsub.s32 %v171_v62, %v1855_v23  ;;  %v297_v52 = vld [vmem:[#allocation4] sm:$0x7] }
  0x46   :  { %1596 = vmatpush3.bf16.msk.msra.mxu0 %vm1595_vm3, %v1740_v43  ;;  %vm1598_vm6 = vmpackc.low %vm132_vm5, %vm131_vm4  ;;  %v181_v15 = vsub.s32 %v178_v63, %v1855_v23  ;;  %vm169_vm12 = vcmask 195712   ;;  %v188_v31 = vsub.s32 %v185_v10, %v1855_v23  ;;  %vm176_vm13 = vcmask 261312  }
  0x47   :  { %1597 = vmatprep.subr.bf16.mxu0 %v1739_v40  ;;  %vm1601_vm9 = vmpackc.low %vm134_vm8, %vm133_vm7  ;;  %vm183_vm14 = vcmask 326912   ;;  %vm190_vm15 = vcmask 392512   ;;  %vm221_vm1 = vcmask 1041409   ;;  %vm223_vm2 = vcmask 392192  }
  0x48   :  { %95 = vadd.xlane.f32.xlu1 %v94_v19  ;;  %77 = vadd.xlane.f32.xlu0 %v76_v20  ;;  %vm309_vm3 = vcmask 1042432   ;;  %vm305_vm4 = vcmask 23552   ;;  %v1745_v62 = vmov 1966171168  }
  0x49   :  { %1522 = vmatpush3.msk.msra.mxu1 %vm309_vm3, %v297_v52  ;;  %v387_v63 = vunpack.c.l.s4 %v1745_v62 }
  0x4a   :  { %1599 = vmatpush3.bf16.msk.msra.mxu0 %vm1598_vm6, %v1740_v43 }
  0x4b   :  { %1600 = vmatprep.subr.bf16.mxu0 %v1739_v40 }
  0x4c   :  { %98 = vadd.xlane.f32.xlu1 %v97_v24  ;;  %80 = vadd.xlane.f32.xlu0 %v79_v25 }
  0x4e   :  { %1602 = vmatpush3.bf16.msk.msra.mxu0 %vm1601_vm9, %v1740_v43 }
  0xc5   :  { %v84_v54 = vpop.xlane.xlu1 %83  ;;  %v66_v55 = vpop.xlane.xlu0 %65 }
  0xc6   :  { %v195_v32 = vrot.slane %v84_v54, %v155_v11  ;;  %v156_v33 = vrot.slane %v66_v55, %v155_v11  ;;  %v443_v11 = vsub.s32 0, %v1855_v23 }
  0xc9   :  { %v87_v56 = vpop.xlane.xlu1 %86  ;;  %v69_v57 = vpop.xlane.xlu0 %68 }
  0xca   :  { %v199_v18 = vrot.slane %v87_v56, %v160_v3  ;;  %v161_v19 = vrot.slane %v69_v57, %v160_v3  ;;  %v1743_v56 = vmov 1   ;;  %v1744_v57 = vmov 3  }
  0xcb   :  { %1650 = vset.pattern.permute.xlu1 %v1743_v56  ;;  %1649 = vset.pattern.permute.xlu0 %v1744_v57 }
  0xcc   :  { %v200_v37 = vsel %vm162_vm11, %v199_v18, %v195_v32  ;;  %v163_v38 = vsel %vm162_vm11, %v161_v19, %v156_v33 }
  0xcd   :  { %v90_v60 = vpop.xlane.xlu1 %89  ;;  %v72_v61 = vpop.xlane.xlu0 %71 }
  0xce   :  { %v204_v20 = vrot.slane %v90_v60, %v167_v4  ;;  %v168_v24 = vrot.slane %v72_v61, %v167_v4  ;;  %v388_v4 = vunpack.c.0.s8 %v387_v63 }
  0xd0   :  { %v205_v39 = vsel %vm169_vm12, %v204_v20, %v200_v37  ;;  %v170_v40 = vsel %vm169_vm12, %v168_v24, %v163_v38  ;;  %v437_v37 = vmul.f32 2.0, %v1870_v30 }
  0xd1   :  { %v93_v6 = vpop.xlane.xlu1 %92  ;;  %v75_v7 = vpop.xlane.xlu0 %74 }
  0xd2   :  { %v209_v34 = vrot.slane %v93_v6, %v174_v14  ;;  %v175_v35 = vrot.slane %v75_v7, %v174_v14  ;;  %v391_v6 = vsub.s32 %v388_v4, %v1855_v23  ;;  %v439_v38 = vmul.f32 0.06666667, %v437_v37 }
  0xd4   :  { %v210_v43 = vsel %vm176_vm13, %v209_v34, %v205_v39  ;;  %v177_v44 = vsel %vm176_vm13, %v175_v35, %v170_v40  ;;  %v1406_v39 = vadd.f32 -1.0, %v439_v38 }
  0xd5   :  { %v96_v25 = vpop.xlane.xlu1 %95  ;;  %v78_v26 = vpop.xlane.xlu0 %77 }
  0xd6   :  { %v214_v27 = vrot.slane %v96_v25, %v181_v15  ;;  %v182_v36 = vrot.slane %v78_v26, %v181_v15 }
  0xd8   :  { %v215_v47 = vsel %vm183_vm14, %v214_v27, %v210_v43  ;;  %v184_v48 = vsel %vm183_vm14, %v182_v36, %v177_v44  ;;  %v1746_v27 = vmov 0   ;;  %v1747_v36 = vmov 2  }
  0xd9   :  { %v99_v41 = vpop.xlane.xlu1 %98  ;;  %v81_v42 = vpop.xlane.xlu0 %80 }
  0xda   :  { %v219_v45 = vrot.slane %v99_v41, %v188_v31  ;;  %v189_v46 = vrot.slane %v81_v42, %v188_v31 }
  0xdc   :  { %v220_v49 = vsel %vm190_vm15, %v219_v45, %v215_v47  ;;  %v191_v50 = vsel %vm190_vm15, %v189_v46, %v184_v48  ;;  %v531_v45 = vmul.f32 2.0, %v1865_v28  ;;  %v532_v46 = vmul.f32 2.0, %v1867_v29 }
  0xdd   :  { %v222_v51 = vsel %vm221_vm1, %v220_v49, %v191_v50 }
  0xde   :  { %1519 = vmatmul.mubr.msk.f32.vlgmr.msra.gmra.mrb[0].mxu0 %vm223_vm2, %v222_v51  ;;  %v533_v51 = vmul.f32 0.06666667, %v531_v45  ;;  %v534_v52 = vmul.f32 0.06666667, %v532_v46 }
  0xdf   :  { %1543 = vmatprep.mubr.msk.f32.mxu0 %vm63_vm0, %v1811_v0 }
 0x1b1   :  { %v292_v53 = vpop.f32.mrb[0].mxu0 }
 0x1b2   :  { %v296_v54 = vmul.f32 0.00390625, %v292_v53  ;;  %v1520_v55 = vpop.f32.mrb[1].mxu0 }
 0x1b4   :  { %1524 = vmatmul.mubr.msk.f32.vlgmr.msra.gmra.mrb[0].mxu1 %vm305_vm4, %v296_v54 }
 0x1b5   :  { %1530 = vmatprep.mubr.msk.f32.mxu1 %vm63_vm0, %v1813_v1 }
 0x287   :  { %v379_v59 = vpop.f32.mrb[0].mxu1 }
 0x288   :  { %v380_v60 = vadd.f32 %v1403_v58, %v379_v59  ;;  %v1525_v61 = vpop.f32.mrb[1].mxu1  ;;  %v1909_v58 = vadd.f32 -1.0, %v534_v52 }
 0x28a   :  { %1658 = vtanh.f32 %v380_v60  ;;  %v408_v0 = vsub.f32 0.0, %v380_v60 }
 0x28c   :  { %v409_v3 = vmul.f32 1.442695, %v408_v0 }
 0x28e   :  { %1660 = vpow2.f32 %v409_v3 }
 0x294   :  { %v1659_v7 = vpop.eup %1658 }
 0x295   :  { %v384_v10 = vmul.f32 0.25, %v1659_v7 }
 0x297   :  { %v392_v1 = vrot.slane %v384_v10, %v391_v6 }
 0x298   :  { %v1661_v14 = vpop.eup %1660 }
 0x299   :  { %v411_v15 = vadd.f32 1.0, %v1661_v14  ;;  %v400_v18 = vrot.slane %v392_v1, %v391_v6  ;;  %v393_v31 = vcombine.high %v392_v1, %v392_v1 }
 0x29b   :  { %1662 = vrcp.f32 %v411_v15  ;;  %v462_v19 = vrot.slane %v400_v18, %v443_v11  ;;  %v407_v35 = vrot.slane %v393_v31, %v391_v6 }
 0x29d   :  { %468 = vperm.xlu1 %1650, %v462_v19   ;;  %v466_v23 = vrot.slane %v407_v35, %v443_v11 }
 0x2a1   :  { %1651 = vset.pattern.permute.xlu1 %v1744_v57  ;;  %v1407_v57 = vadd.f32 -1.0, %v533_v51 }
 0x2a5   :  { %v1663_v20 = vpop.eup %1662 }
 0x2a6   :  { %v421_v24 = vrot.slane %v1663_v20, %v391_v6 }
 0x2a8   :  { %v429_v25 = vrot.slane %v421_v24, %v391_v6  ;;  %v422_v26 = vcombine.high %v421_v24, %v421_v24 }
 0x2aa   :  { %v444_v32 = vrot.slane %v429_v25, %v443_v11  ;;  %v436_v33 = vrot.slane %v422_v26, %v391_v6 }
 0x2ac   :  { %450 = vperm.xlu0 %1649, %v444_v32   ;;  %v448_v34 = vrot.slane %v436_v33, %v443_v11 }
 0x2ae   :  { %454 = vperm.xlu1 %1651, %v448_v34  }
 0x2b0   :  { %1657 = vset.pattern.permute.xlu0 %v1746_v27 }
 0x2b2   :  { %1652 = vset.pattern.permute.xlu1 %v1743_v56 }
 0x2b3   :  { %472 = vperm.xlu1 %1652, %v466_v23  }
 0x2b7   :  { %1653 = vset.pattern.permute.xlu1 %v1747_v36 }
 0x2b8   :  { %538 = vperm.xlu1 %1653, %v444_v32  }
 0x2bc   :  { %1654 = vset.pattern.permute.xlu1 %v1746_v27 }
 0x2bd   :  { %550 = vperm.xlu1 %1654, %v462_v19  }
 0x2c1   :  { %1655 = vset.pattern.permute.xlu1 %v1747_v36 }
 0x2c2   :  { %542 = vperm.xlu1 %1655, %v448_v34  }
 0x2c6   :  { %1656 = vset.pattern.permute.xlu1 %v1746_v27 }
 0x2c7   :  { %554 = vperm.xlu1 %1656, %v466_v23  }
 0x31c   :  { %v469_v40 = vpop.permute.xlu1 %468 }
 0x32b   :  { %v451_v41 = vpop.permute.xlu0 %450 }
 0x32c   :  { %v457_v42 = vmul.f32 %v1406_v39, %v451_v41 }
 0x32d   :  { %v455_v43 = vpop.permute.xlu1 %454 }
 0x32e   :  { %v475_v44 = vadd.f32 %v469_v40, %v457_v42  ;;  %v458_v48 = vmul.f32 %v1406_v39, %v455_v43 }
 0x330   :  { %v477_v47 = vadd.f32 1.0, %v475_v44 }
 0x332   :  { %v479_v49 = vmul.f32 0.5, %v477_v47  ;;  %v473_v50 = vpop.permute.xlu1 %472 }
 0x333   :  { %v476_v53 = vadd.f32 %v473_v50, %v458_v48 }
 0x334   :  { %v481_v54 = vmul.f32 15.0, %v479_v49 }
 0x335   :  { %v478_v55 = vadd.f32 1.0, %v476_v53 }
 0x336   :  { %v483_v56 = vfloor.f32 %v481_v54 }
 0x337   :  { %v480_v59 = vmul.f32 0.5, %v478_v55  ;;  %v539_v60 = vpop.permute.xlu1 %538 }
 0x338   :  { %v485_v61 = vsub.f32 %v481_v54, %v483_v56  ;;  %vm487_vm5 = vcmp.ge.f32.partialorder %v483_v56, 0.0  ;;  %vm489_vm6 = vcmp.le.f32.partialorder %v483_v56, 15.0  ;;  %v493_v62 = vadd.f32 1.0, %v483_v56 }
 0x339   :  { %v482_v0 = vmul.f32 15.0, %v480_v59  ;;  %vm501_vm7 = vcmp.eq.f32.partialorder %v1865_v28, %v483_v56  ;;  %v545_v63 = vmul.f32 %v1407_v57, %v539_v60  ;;  %v546_v3 = vmul.f32 %v1909_v58, %v539_v60  ;;  %vm1913_vm8 = vmand %vm487_vm5, %vm489_vm6 }
 0x33a   :  { %vm502_vm9 = vcmp.eq.f32.partialorder %v1867_v29, %v483_v56  ;;  %v509_v6 = vsub.f32 1.0, %v485_v61  ;;  %vm495_vm10 = vcmp.ge.f32.partialorder %v493_v62, 0.0  ;;  %vm497_vm11 = vcmp.le.f32.partialorder %v493_v62, 15.0  ;;  %vm505_vm12 = vmand %vm501_vm7, %vm1913_vm8 }
 0x33b   :  { %v484_v7 = vfloor.f32 %v482_v0  ;;  %vm515_vm13 = vcmp.eq.f32.partialorder %v1865_v28, %v493_v62  ;;  %vm499_vm14 = vmand %vm495_vm10, %vm497_vm11  ;;  %vm516_vm15 = vcmp.eq.f32.partialorder %v1867_v29, %v493_v62 }
 0x33c   :  { %v551_v10 = vpop.permute.xlu1 %550  ;;  %v511_v1 = vsel %vm505_vm12, %v509_v6, 0.0  ;;  %vm506_vm1 = vmand %vm502_vm9, %vm1913_vm8 }
 0x33d   :  { %v486_v11 = vsub.f32 %v482_v0, %v484_v7  ;;  %v557_v14 = vadd.f32 %v551_v10, %v545_v63  ;;  %v1922_v15 = vadd.f32 %v551_v10, %v546_v3  ;;  %vm488_vm2 = vcmp.ge.f32.partialorder %v484_v7, 0.0  ;;  %vm519_vm3 = vmand %vm515_vm13, %vm499_vm14 }
 0x33e   :  { %v512_v18 = vsel %vm506_vm1, %v509_v6, 0.0  ;;  %vm490_vm4 = vcmp.le.f32.partialorder %v484_v7, 15.0  ;;  %v494_v19 = vadd.f32 1.0, %v484_v7  ;;  %vm520_vm5 = vmand %vm516_vm15, %vm499_vm14  ;;  %v523_v24 = vsel %vm519_vm3, %v485_v61, 0.0 }
 0x33f   :  { %v561_v20 = vadd.f32 1.0, %v557_v14  ;;  %vm503_vm6 = vcmp.eq.f32.partialorder %v1865_v28, %v484_v7  ;;  %v524_v25 = vsel %vm520_vm5, %v485_v61, 0.0  ;;  %v527_v26 = vadd.f32 %v523_v24, %v511_v1  ;;  %vm492_vm7 = vmand %vm488_vm2, %vm490_vm4 }
 0x340   :  { %vm496_vm10 = vcmp.ge.f32.partialorder %v494_v19, 0.0  ;;  %vm498_vm11 = vcmp.le.f32.partialorder %v494_v19, 15.0  ;;  %v510_v31 = vsub.f32 1.0, %v486_v11  ;;  %v528_v34 = vadd.f32 %v524_v25, %v512_v18  ;;  %vm507_vm12 = vmand %vm503_vm6, %vm492_vm7 }
 0x341   :  { %v565_v32 = vmul.f32 0.5, %v561_v20  ;;  %v543_v33 = vpop.permute.xlu1 %542  ;;  %vm500_vm8 = vmand %vm496_vm10, %vm498_vm11  ;;  %vm504_vm9 = vcmp.eq.f32.partialorder %v1867_v29, %v484_v7  ;;  %vm517_vm13 = vcmp.eq.f32.partialorder %v1865_v28, %v494_v19  ;;  %vm518_vm14 = vcmp.eq.f32.partialorder %v1867_v29, %v494_v19 }
 0x342   :  { %v1603_v27 = vpack.c.bf16 %v528_v34, %v527_v26  ;;  %vm508_vm15 = vmand %vm504_vm9, %vm492_vm7  ;;  %v513_v36 = vsel %vm507_vm12, %v510_v31, 0.0  ;;  %v547_v38 = vmul.f32 %v1407_v57, %v543_v33  ;;  %v548_v42 = vmul.f32 %v1909_v58, %v543_v33 }
 0x343   :  { %v569_v35 = vmul.f32 15.0, %v565_v32  ;;  %vm521_vm1 = vmand %vm517_vm13, %vm500_vm8  ;;  %v514_v40 = vsel %vm508_vm15, %v510_v31, 0.0 }
 0x344   :  { %1604 = vmatprep.subr.bf16.mxu1 %v1603_v27  ;;  %vm522_vm2 = vmand %vm518_vm14, %vm500_vm8  ;;  %v525_v37 = vsel %vm521_vm1, %v486_v11, 0.0 }
 0x345   :  { %v573_v23 = vfloor.f32 %v569_v35  ;;  %1606 = vmatpush3.bf16.msra.mxu1 %v1603_v27  ;;  %v526_v41 = vsel %vm522_vm2, %v486_v11, 0.0  ;;  %v529_v44 = vadd.f32 %v525_v37, %v513_v36 }
 0x346   :  { %v555_v39 = vpop.permute.xlu1 %554  ;;  %v530_v46 = vadd.f32 %v526_v41, %v514_v40 }
 0x347   :  { %v593_v43 = vadd.f32 1.0, %v573_v23  ;;  %v559_v28 = vadd.f32 %v555_v39, %v547_v38  ;;  %v577_v29 = vsub.f32 %v569_v35, %v573_v23  ;;  %v560_v45 = vadd.f32 %v555_v39, %v548_v42 }
 0x348   :  { %1531 = vmatmul.mubr.msk.f32.vlgmr.msra.gmra.mrb[2].mxu1 %vm63_vm0, %v1821_v5  ;;  %v1607_v48 = vpack.c.bf16 %v530_v46, %v529_v44  ;;  %vm581_vm7 = vcmp.ge.f32.partialorder %v573_v23, 0.0  ;;  %vm585_vm10 = vcmp.le.f32.partialorder %v573_v23, 15.0  ;;  %vm609_vm8 = vcmp.eq.f32.partialorder %v1870_v30, %v573_v23 }
 0x349   :  { %vm597_vm3 = vcmp.ge.f32.partialorder %v593_v43, 0.0  ;;  %vm601_vm4 = vcmp.le.f32.partialorder %v593_v43, 15.0  ;;  %1533 = vmatprep.mubr.msk.f32.mxu1 %vm63_vm0, %v1829_v9  ;;  %vm625_vm6 = vcmp.eq.f32.partialorder %v1870_v30, %v593_v43  ;;  %v563_v47 = vadd.f32 1.0, %v559_v28  ;;  %vm589_vm9 = vmand %vm581_vm7, %vm585_vm10 }
 0x34a   :  { %vm605_vm5 = vmand %vm597_vm3, %vm601_vm4  ;;  %v617_v49 = vsub.f32 1.0, %v577_v29  ;;  %1608 = vmatprep.subr.bf16.mxu0 %v1607_v48  ;;  %v564_v57 = vadd.f32 1.0, %v560_v45 }
 0x34b   :  { %vm629_vm11 = vmand %vm625_vm6, %vm605_vm5  ;;  %v567_v50 = vmul.f32 0.5, %v563_v47  ;;  %1610 = vmatpush3.bf16.msra.mxu0 %v1607_v48 }
 0x34c   :  { %1534 = vmatmul.mubr.msk.f32.gmra.mrb[4].mxu1 %vm63_vm0, %v1837_v13  ;;  %v633_v5 = vsel %vm629_vm11, %v577_v29, 0.0  ;;  %vm613_vm12 = vmand %vm609_vm8, %vm589_vm9  ;;  %v568_v59 = vmul.f32 0.5, %v564_v57 }
 0x34d   :  { %1536 = vmatprep.mubr.msk.f32.mxu1 %vm63_vm0, %v1845_v17  ;;  %v571_v9 = vmul.f32 15.0, %v567_v50  ;;  %v621_v52 = vsel %vm613_vm12, %v617_v49, 0.0 }
 0x34e   :  { %1544 = vmatmul.mubr.msk.f32.vlgmr.msra.gmra.mrb[2].mxu0 %vm63_vm0, %v1815_v2  ;;  %v1945_v13 = vadd.f32 %v633_v5, %v621_v52  ;;  %v572_v60 = vmul.f32 15.0, %v568_v59 }
 0x34f   :  { %v575_v51 = vfloor.f32 %v571_v9  ;;  %1546 = vmatprep.mubr.msk.f32.mxu0 %vm63_vm0, %v1827_v8 }
 0x350   :  { %1537 = vmatmul.mubr.msk.f32.gmra.mrb[6].mxu1 %vm63_vm0, %v1853_v22  ;;  %v576_v61 = vfloor.f32 %v572_v60 }
 0x351   :  { %v579_v53 = vsub.f32 %v571_v9, %v575_v51  ;;  %vm583_vm13 = vcmp.ge.f32.partialorder %v575_v51, 0.0  ;;  %vm587_vm14 = vcmp.le.f32.partialorder %v575_v51, 15.0  ;;  %v595_v54 = vadd.f32 1.0, %v575_v51  ;;  %1556 = vmatprep.mubr.msk.f32.mxu1 %vm63_vm0, %v1945_v13 }
 0x352   :  { %vm591_vm15 = vmand %vm583_vm13, %vm587_vm14  ;;  %vm611_vm3 = vcmp.eq.f32.partialorder %v1870_v30, %v575_v51  ;;  %1547 = vmatmul.mubr.msk.f32.gmra.mrb[4].mxu0 %vm63_vm0, %v1835_v12  ;;  %v562_v12 = vadd.f32 1.0, %v1922_v15  ;;  %v596_v62 = vadd.f32 1.0, %v576_v61  ;;  %v580_v1 = vsub.f32 %v572_v60, %v576_v61 }
 0x353   :  { %vm599_vm1 = vcmp.ge.f32.partialorder %v595_v54, 0.0  ;;  %vm603_vm2 = vcmp.le.f32.partialorder %v595_v54, 15.0  ;;  %v619_v17 = vsub.f32 1.0, %v579_v53  ;;  %vm627_vm5 = vcmp.eq.f32.partialorder %v1870_v30, %v595_v54  ;;  %1549 = vmatprep.mubr.msk.f32.mxu0 %vm63_vm0, %v1843_v16  ;;  %vm615_vm6 = vmand %vm611_vm3, %vm591_vm15 }
 0x354   :  { %vm607_vm4 = vmand %vm599_vm1, %vm603_vm2  ;;  %v566_v55 = vmul.f32 0.5, %v562_v12  ;;  %vm584_vm3 = vcmp.ge.f32.partialorder %v576_v61, 0.0  ;;  %v620_v19 = vsub.f32 1.0, %v580_v1 }
 0x355   :  { %v623_v2 = vsel %vm615_vm6, %v619_v17, 0.0  ;;  %vm631_vm7 = vmand %vm627_vm5, %vm607_vm4  ;;  %vm588_vm4 = vcmp.le.f32.partialorder %v576_v61, 15.0  ;;  %vm600_vm5 = vcmp.ge.f32.partialorder %v596_v62, 0.0  ;;  %vm604_vm6 = vcmp.le.f32.partialorder %v596_v62, 15.0 }
 0x356   :  { %1550 = vmatmul.mubr.msk.f32.gmra.mrb[6].mxu0 %vm63_vm0, %v1851_v21  ;;  %v635_v8 = vsel %vm631_vm7, %v579_v53, 0.0  ;;  %v570_v56 = vmul.f32 15.0, %v566_v55  ;;  %vm592_vm7 = vmand %vm584_vm3, %vm588_vm4 }
 0x357   :  { %v1959_v22 = vadd.f32 %v635_v8, %v623_v2 }
 0x358   :  { %v574_v58 = vfloor.f32 %v570_v56 }
 0x359   :  { %1577 = vmatprep.mubr.msk.f32.mxu0 %vm63_vm0, %v1959_v22 }
 0x35a   :  { %v594_v16 = vadd.f32 1.0, %v574_v58  ;;  %vm582_vm10 = vcmp.ge.f32.partialorder %v574_v58, 0.0  ;;  %vm586_vm11 = vcmp.le.f32.partialorder %v574_v58, 15.0  ;;  %v578_v21 = vsub.f32 %v570_v56, %v574_v58 }
 0x35b   :  { %vm590_vm12 = vmand %vm582_vm10, %vm586_vm11  ;;  %vm610_vm13 = vcmp.eq.f32.partialorder %v1870_v30, %v574_v58  ;;  %vm612_vm10 = vcmp.eq.f32.partialorder %v1870_v30, %v576_v61 }
 0x35c   :  { %vm598_vm8 = vcmp.ge.f32.partialorder %v594_v16, 0.0  ;;  %vm602_vm9 = vcmp.le.f32.partialorder %v594_v16, 15.0  ;;  %vm626_vm15 = vcmp.eq.f32.partialorder %v1870_v30, %v594_v16  ;;  %vm614_vm1 = vmand %vm610_vm13, %vm590_vm12  ;;  %v618_v0 = vsub.f32 1.0, %v578_v21 }
 0x35d   :  { %vm606_vm14 = vmand %vm598_vm8, %vm602_vm9  ;;  %vm628_vm8 = vcmp.eq.f32.partialorder %v1870_v30, %v596_v62  ;;  %vm1045_vm13 = vcmask 125952  }
 0x35e   :  { %vm1966_vm2 = vmand %vm626_vm15, %vm606_vm14  ;;  %v622_v7 = vsel %vm614_vm1, %v618_v0, 0.0 }
 0x35f   :  { %v634_v10 = vsel %vm1966_vm2, %v578_v21, 0.0  ;;  %vm608_vm11 = vmand %vm600_vm5, %vm604_vm6 }
 0x360   :  { %v638_v15 = vadd.f32 %v634_v10, %v622_v7  ;;  %vm616_vm9 = vmand %vm612_vm10, %vm592_vm7 }
 0x361   :  { %vm632_vm12 = vmand %vm628_vm8, %vm608_vm11  ;;  %v624_v33 = vsel %vm616_vm9, %v620_v19, 0.0 }
 0x362   :  { %v636_v34 = vsel %vm632_vm12, %v580_v1, 0.0 }
 0x363   :  { %v640_v27 = vadd.f32 %v636_v34, %v624_v33 }
 0x41b   :  { %v1532_v3 = vpop.f32.mrb[2].mxu1 }
 0x41c   :  { %v725_v4 = vpop.f32.mrb[3].mxu1 }
 0x41d   :  { %v1611_v6 = vpack.c.bf16 %v1532_v3, %v725_v4 }
 0x41f   :  { %1612 = vmatprep.subr.bf16.mxu1 %v1611_v6  ;;  %v1535_v11 = vpop.f32.mrb[4].mxu1 }
 0x420   :  { %1614 = vmatpush3.bf16.msra.mxu1 %v1611_v6  ;;  %v735_v14 = vpop.f32.mrb[5].mxu1 }
 0x421   :  { %v1619_v18 = vpack.c.bf16 %v1535_v11, %v735_v14  ;;  %v1545_v24 = vpop.f32.mrb[2].mxu0 }
 0x422   :  { %v838_v26 = vpop.f32.mrb[3].mxu0 }
 0x423   :  { %1557 = vmatmul.mubr.msk.f32.vlgmr.msra.gmra.mrb[8].mxu1 %vm63_vm0, %v638_v15  ;;  %v1538_v20 = vpop.f32.mrb[6].mxu1  ;;  %v1615_v32 = vpack.c.bf16 %v1545_v24, %v838_v26 }
 0x424   :  { %1563 = vmatprep.mubr.msk.f32.mxu1 %vm63_vm0, %v1959_v22  ;;  %v745_v25 = vpop.f32.mrb[7].mxu1 }
 0x425   :  { %v1627_v31 = vpack.c.bf16 %v1538_v20, %v745_v25  ;;  %v1548_v35 = vpop.f32.mrb[4].mxu0  ;;  %1616 = vmatprep.subr.bf16.mxu1 %v1615_v32 }
 0x426   :  { %v848_v30 = vpop.f32.mrb[5].mxu0  ;;  %1618 = vmatpush3.bf16.msra.mxu1 %v1615_v32 }
 0x427   :  { %v1623_v23 = vpack.c.bf16 %v1548_v35, %v848_v30  ;;  %1620 = vmatprep.subr.bf16.mxu1 %v1619_v18 }
 0x429   :  { %v1551_v36 = vpop.f32.mrb[6].mxu0  ;;  %1564 = vmatmul.mubr.msk.f32.vlgmr.msra.gmra.mrb[10].mxu1 %vm63_vm0, %v640_v27  ;;  %1624 = vmatprep.subr.bf16.mxu0 %v1623_v23 }
 0x42a   :  { %v858_v37 = vpop.f32.mrb[7].mxu0  ;;  %1622 = vmatpush3.bf16.msra.mxu1 %v1619_v18  ;;  %1570 = vmatprep.mubr.msk.f32.mxu1 %vm63_vm0, %v1945_v13 }
 0x42b   :  { %v1631_v38 = vpack.c.bf16 %v1551_v36, %v858_v37  ;;  %1626 = vmatpush3.bf16.msra.mxu0 %v1623_v23  ;;  %1628 = vmatprep.subr.bf16.mxu1 %v1627_v31 }
 0x42d   :  { %1571 = vmatmul.mubr.msk.f32.vlgmr.msra.gmra.mrb[12].mxu1 %vm63_vm0, %v638_v15  ;;  %1632 = vmatprep.subr.bf16.mxu0 %v1631_v38 }
 0x42e   :  { %1578 = vmatmul.mubr.msk.f32.vlgmr.msra.gmra.mrb[8].mxu0 %vm63_vm0, %v640_v27  ;;  %1630 = vmatpush3.bf16.msra.mxu1 %v1627_v31 }
 0x42f   :  { %1584 = vmatprep.mubr.msk.f32.mxu1 %vm63_vm0, %v1945_v13  ;;  %1634 = vmatpush3.bf16.msra.mxu0 %v1631_v38 }
 0x430   :  { %1591 = vmatprep.mubr.msk.f32.mxu0 %vm63_vm0, %v1959_v22 }
 0x431   :  { %1585 = vmatmul.mubr.msk.f32.vlgmr.msra.gmra.mrb[14].mxu1 %vm63_vm0, %v638_v15 }
 0x432   :  { %1592 = vmatmul.mubr.msk.f32.vlgmr.msra.gmra.mrb[10].mxu0 %vm63_vm0, %v640_v27 }
 0x4f6   :  { %v1558_v39 = vpop.f32.mrb[8].mxu1 }
 0x4f7   :  { %v1446_v40 = vpack.c.bf16 %v1558_v39, %v1558_v39  ;;  %v939_v41 = vpop.f32.mrb[9].mxu1 }
 0x4f8   :  { %v1445_v42 = vpack.c.bf16 %v939_v41, %v939_v41 }
 0x4f9   :  { %1047 = vst.msk [vmem:[%s2039_s3 + $0x4] sm:$0xf] %vm1045_vm13, %v1446_v40 }
 0x4fa   :  { %1046 = vst.msk [vmem:[%s2039_s3] sm:$0xf] %vm1045_vm13, %v1445_v42 }
 0x4fc   :  { %v1565_v43 = vpop.f32.mrb[10].mxu1 }
 0x4fd   :  { %v1448_v28 = vpack.c.bf16 %v1565_v43, %v1565_v43  ;;  %v1020_v44 = vpop.f32.mrb[11].mxu1 }
 0x4fe   :  { %v1447_v29 = vpack.c.bf16 %v1020_v44, %v1020_v44 }
 0x4ff   :  { %1049 = vst.msk [vmem:[%s2039_s3 + $0x1c] sm:$0xf] %vm1045_vm13, %v1448_v28 }
 0x500   :  { %1048 = vst.msk [vmem:[%s2039_s3 + $0x18] sm:$0xf] %vm1045_vm13, %v1447_v29  ;;  %v1572_v45 = vpop.f32.mrb[12].mxu1 }
 0x501   :  { %v1450_v46 = vpack.c.bf16 %v1572_v45, %v1572_v45  ;;  %v1579_v47 = vpop.f32.mrb[8].mxu0  ;;  %v1116_v48 = vpop.f32.mrb[13].mxu1 }
 0x502   :  { %v1452_v49 = vpack.c.bf16 %v1579_v47, %v1579_v47  ;;  %v1449_v50 = vpack.c.bf16 %v1116_v48, %v1116_v48  ;;  %v1191_v5 = vpop.f32.mrb[9].mxu0 }
 0x503   :  { %1217 = vst.msk [vmem:[%s2039_s3 + $0xc] sm:$0xf] %vm1045_vm13, %v1450_v46  ;;  %v1451_v9 = vpack.c.bf16 %v1191_v5, %v1191_v5 }
 0x504   :  { %1219 = vst.msk [vmem:[%s2039_s3 + $0x24] sm:$0xf] %vm1045_vm13, %v1452_v49  ;;  %1216 = vst.msk [vmem:[%s2039_s3 + $0x8] sm:$0xf] %vm1045_vm13, %v1449_v50  ;;  %v1586_v51 = vpop.f32.mrb[14].mxu1 }
 0x505   :  { %1218 = vst.msk [vmem:[%s2039_s3 + $0x20] sm:$0xf] %vm1045_vm13, %v1451_v9  ;;  %v1454_v52 = vpack.c.bf16 %v1586_v51, %v1586_v51  ;;  %v1593_v13 = vpop.f32.mrb[10].mxu0  ;;  %v1286_v53 = vpop.f32.mrb[15].mxu1 }
 0x506   :  { %v1456_v54 = vpack.c.bf16 %v1593_v13, %v1593_v13  ;;  %v1453_v17 = vpack.c.bf16 %v1286_v53, %v1286_v53  ;;  %v1361_v2 = vpop.f32.mrb[11].mxu0 }
 0x507   :  { %1387 = vst.msk [vmem:[%s2039_s3 + $0x14] sm:$0xf] %vm1045_vm13, %v1454_v52  ;;  %v1455_v8 = vpack.c.bf16 %v1361_v2, %v1361_v2 }
 0x508   :  { %1389 = vst.msk [vmem:[%s2039_s3 + $0x2c] sm:$0xf] %vm1045_vm13, %v1456_v54  ;;  %1386 = vst.msk [vmem:[%s2039_s3 + $0x10] sm:$0xf] %vm1045_vm13, %v1453_v17 }
 0x509   :  { %1388 = vst.msk [vmem:[%s2039_s3 + $0x28] sm:$0xf] %vm1045_vm13, %v1455_v8 }
 0x50a   :  { %1394 = vsyncpa [#allocation3], 1 }
 0x50b   :  { %1395 = vsyncpa [#allocation5], 1 }

// kernel: net_forward.3
= control target key start
LH: loop header
LB: loop body
LE: loop exit
PB: predicated region body
PF: predicated region fallthrough
CT: control target
= control target key end

     0   :  { %s3961_s0 = inlined_call_operand.vmem [shape: bf16[2,768], index: 0, kind: input, shape index: {}]   ;;  %s3962_s1 = inlined_call_operand.hbm [shape: bf16[768,1024], index: 1, kind: input, shape index: {}]   ;;  %s3963_s2 = inlined_call_operand.hbm [shape: f32[1,1024], index: 2, kind: input, shape index: {}]   ;;  %s3964_s3 = inlined_call_operand.hbm [shape: bf16[1024,256], index: 3, kind: input, shape index: {}]   ;;  %s3965_s4 = inlined_call_operand.vmem [shape: f32[2,2,256], index: 4, kind: output, shape index: {}]  }
   0x1   :  { %3968 = sst [smem:[#allocation10_spill]] %s3962_s1 }
   0x2   :  { %9 = vsyncpa [#allocation4], 0 }
   0x3   :  { %11 = vsyncpa [#allocation4 + $0x1], 0 }
   0x4   :  { %12 = vsyncpa [#allocation6], 0 }
   0x5   :  { %14 = vsyncpa [#allocation6 + $0x1], 0  ;;  %s3437_s15 = smov 0   ;;  %s3439_s16 = smov 0  }
   0x6   :  { %s3441_s17 = smov 0   ;;  %s3443_s18 = smov 0  }
   0x7   :  { %s3445_s19 = smov 0   ;;  %s3447_s20 = smov 0  }
   0x8 LB: > { %s3967_s21 = sadd.s32 4294967295, %s3400_s20   ;;  %s32_s22 = sadd.s32 1, %s3396_s19  ;;  %s3400_s20 = sphi %s3447_s20, %s20_s20   ;;  %s3396_s19 = sphi %s3445_s19, %s3982_s19   ;;  %s3392_s18 = sphi %s3443_s18, %s3981_s18   ;;  %s3388_s17 = sphi %s3441_s17, %s3980_s17   ;;  %s3384_s16 = sphi %s3439_s16, %s3979_s16   ;;  %s3380_s15 = sphi %s3437_s15, %s3978_s15  }
   0x9   : > { %p34_p0 = scmp.ge.s32.totalorder %s32_s22, 2  ;;  %s67_s23 = sadd.s32 1, %s3388_s17 }
   0xa   : > { %p74_p1 = scmp.ne.s32.totalorder %s3388_s17, %s3384_s16  ;;  %p75_p2 = scmp.eq.s32.totalorder %s3400_s20, 0 }
   0xb   : > { %s3984_s22 = smov (%p34_p0, %s32_s22), 0  ;;  %p80_p4 = scmp.ne.s32.totalorder %s3384_s16, %s3380_s15 }
   0xc   : > { %p76_p3 = por %p75_p2, %p74_p1  ;;  %s63_s24 = ssub.s32 %s3396_s19, %s3984_s22 }
   0xd   : > { %p81_p5 = scmp.eq.s32.totalorder %s3967_s21, 0  ;;  %p65_p6 = scmp.eq.s32.totalorder %s63_s24, 0 }
   0xe   : > { %p2815_p8 = scmp.lt.s32.totalorder %s3400_s20, 2  ;;  %s3487_s27 = sand.u32 1, %s3388_s17  }
   0xf   : > { %p3478_p7 = por %p81_p5, %p80_p4  ;;  %s2797_s29 = smul.u32 1536, %s3487_s27 }
  0x10   : > { %s3484_s26 = scalar_select %p65_p6, %s3388_s17, %s67_s23  }
  0x11   : > { %s3969_s25 = scalar_select %p3478_p7, 1, 0 }
  0x12   : > { %p3489_p9 = pnand %p2815_p8, %p76_p3  ;;  %s214_s30 = sand.u32 1, %s3400_s20  }
  0x13   : > { %s2503_s5 = sshll.u32 %s3487_s27, 2  ;;  %s2775_s6 = sshll.u32 %s3396_s19, 6 }
  0x14   : > { %s3500_s9 = scalar_lea.hbm %s3963_s2, %s2775_s6  ;;  %s218_s10 = scalar_lea.vmem [#allocation5], %s2503_s5 }
  0x15   : > { %s226_s11 = sshll.u32 %s218_s10, 4  ;;  %s2506_s12 = sshll.u32 %s3487_s27, 9  ;;  %s3503_s11 = int_to_ptr.vmem [resolvable:$true] %s226_s11 }
  0x16   : > { %s3506_s13 = scalar_lea.sflag [#allocation6], %s214_s30  ;;  %s3256_s14 = scalar_lea.hbm %s3500_s9, 64 }
  0x17   : > { %p3257_p11 = scmp.ne.s32.totalorder %s3500_s9, %s3256_s14  ;;  %p3512_p12 = pneg %p3489_p9 }
  0x18   : > { %s3261_s5 = scalar_lea.hbm %s3963_s2, 128  ;;  %p3262_p1 = scmp.lt.u32.totalorder %s3500_s9, %s3963_s2 }
  0x19   : > { %p3259_p13 = pnand %p3512_p12, %p3257_p11  ;;  %p3263_p2 = scmp.lt.u32.totalorder %s3261_s5, %s3256_s14 }
  0x1a   : > { %p3265_p4 = scmp.lt.u32.totalorder %s3256_s14, %s3500_s9 }
  0x1b   : > { %p3260_p0 = pneg %p3259_p13  ;;  %p3264_p3 = por %p3263_p2, %p3262_p1 }
  0x1d   : > { %p3266_p5 = por %p3265_p4, %p3264_p3 }
  0x1f   : > { %p3267_p6 = pnand %p3266_p5, %p3260_p0 }
  0x21   : > { %3270 = shalt.err (!%p3267_p6)
}
  0x22   : > { %s3271_s30 = scalar_lea.vmem %s3503_s11, 64  ;;  %s3402_s8 = smov [#allocation5]  }
  0x23   : > { %p3272_p8 = scmp.ne.s32.totalorder %s3503_s11, %s3271_s30  ;;  %s3276_s10 = sshll.u32 %s3402_s8, 4  ;;  %s3277_s10 = int_to_ptr.vmem [resolvable:$false] %s3276_s10 }
  0x24   : > { %s3278_s23 = scalar_lea.vmem %s3277_s10, 128  ;;  %p3279_p10 = scmp.lt.s32.totalorder %s3503_s11, %s3277_s10 }
  0x25   : > { %p3274_p11 = pnand %p3272_p8, %p3512_p12  ;;  %p3280_p7 = scmp.lt.s32.totalorder %s3278_s23, %s3271_s30 }
  0x27   : > { %p3275_p13 = pneg %p3274_p11  ;;  %p3281_p1 = por %p3280_p7, %p3279_p10 }
  0x29   : > { %p3282_p2 = pnand %p3281_p1, %p3275_p13 }
  0x2b   : > { %3285 = shalt.err (!%p3282_p2)
}
  0x2c   : > { %2811 = dma.hbm_to_vmem [thread:$0]  (!%p3489_p9), %s3500_s9, 64, %s3503_s11, %s3506_s13  }
  0x2d   : > { %p253_p0 = scmp.lt.s32.totalorder %s3400_s20, 3  ;;  %p3972_p3 = scmp.ge.s32.totalorder %s3400_s20, 1 }
  0x2e   : > { %s2774_s24 = sshll.u32 %s3396_s19, 8  ;;  %s194_s5 = scalar_lea.vmem [#allocation3], %s2797_s29 }
  0x2f   : > { %p3539_p4 = pnand %p3972_p3, %p253_p0  ;;  %s204_s6 = sshll.u32 %s194_s5, 4  ;;  %s3551_s6 = int_to_ptr.vmem [resolvable:$true] %s204_s6 }
  0x30   : > { %s3974_s1 = sld [smem:[#allocation10_spill]]  ;;  %s191_s9 = scalar_lea.sflag [#allocation4], %s3487_s27 }
  0x31   : > { %s3973_s14 = scalar_select %p3539_p4, 1, 0 }
  0x36   : > { %s3549_s8 = scalar_lea.hbm %s3974_s1, %s2774_s24  ;;  %s3291_s23 = scalar_lea.hbm %s3974_s1, 49152 }
  0x37   : > { %s3286_s11 = scalar_lea.hbm %s3549_s8, 24576  ;;  %p3292_p6 = scmp.lt.u32.totalorder %s3549_s8, %s3974_s1 }
  0x38   : > { %p3287_p7 = scmp.ne.s32.totalorder %s3549_s8, %s3286_s11  ;;  %p3293_p8 = scmp.lt.u32.totalorder %s3291_s23, %s3286_s11 }
  0x39   : > { %p3295_p13 = scmp.lt.u32.totalorder %s3286_s11, %s3549_s8 }
  0x3a   : > { %p3289_p10 = pnand %p3287_p7, %p3512_p12  ;;  %p3294_p11 = por %p3293_p8, %p3292_p6 }
  0x3c   : > { %p3290_p5 = pneg %p3289_p10  ;;  %p3296_p1 = por %p3295_p13, %p3294_p11 }
  0x3e   : > { %p3297_p2 = pnand %p3296_p1, %p3290_p5 }
  0x40   : > { %3300 = shalt.err (!%p3297_p2)
}
  0x41   : > { %s3301_s24 = scalar_lea.vmem %s3551_s6, 24576  ;;  %s3403_s30 = smov [#allocation3]  }
  0x42   : > { %p3302_p0 = scmp.ne.s32.totalorder %s3551_s6, %s3301_s24  ;;  %s3306_s10 = sshll.u32 %s3403_s30, 4  ;;  %s3307_s10 = int_to_ptr.vmem [resolvable:$false] %s3306_s10 }
  0x43   : > { %s3308_s29 = scalar_lea.vmem %s3307_s10, 49152  ;;  %p3309_p10 = scmp.lt.s32.totalorder %s3551_s6, %s3307_s10 }
  0x44   : > { %p3304_p3 = pnand %p3302_p0, %p3512_p12  ;;  %p3310_p4 = scmp.lt.s32.totalorder %s3308_s29, %s3301_s24 }
  0x46   : > { %p3305_p7 = pneg %p3304_p3  ;;  %p3311_p6 = por %p3310_p4, %p3309_p10 }
  0x48   : > { %p3312_p8 = pnand %p3311_p6, %p3305_p7 }
  0x4a   : > { %3315 = shalt.err (!%p3312_p8)
}
  0x4b   : > { %s3404_s11 = smov 512   ;;  %s3405_s23 = smov 256  }
  0x4c   : > { %s3406_s5 = smov 16   ;;  %s2777_s7 = sshll.u32 %s3396_s19, 13 }
  0x4d   : > { %2808 = dma.hbm_to_vmem [thread:$0]  (!%p3489_p9), %s3549_s8, 24576, %s3551_s6, %s191_s9, %s3404_s11, %s3405_s23, %s3406_s5  }
  0x4e   : > { %s237_s30 = scalar_lea.vmem [#allocation7], %s2506_s12  ;;  %s3583_s21 = scalar_lea.hbm %s3964_s3, %s2777_s7 }
  0x4f   : > { %s245_s24 = sshll.u32 %s237_s30, 4  ;;  %s3316_s1 = scalar_lea.hbm %s3583_s21, 8192  ;;  %s3585_s24 = int_to_ptr.vmem [resolvable:$true] %s245_s24 }
  0x50   : > { %p3317_p4 = scmp.ne.s32.totalorder %s3583_s21, %s3316_s1  ;;  %s3321_s12 = scalar_lea.hbm %s3964_s3, 16384 }
  0x51   : > { %p3322_p13 = scmp.lt.u32.totalorder %s3583_s21, %s3964_s3  ;;  %p3323_p1 = scmp.lt.u32.totalorder %s3321_s12, %s3316_s1 }
  0x52   : > { %p3319_p5 = pnand %p3317_p4, %p3512_p12  ;;  %p3325_p0 = scmp.lt.u32.totalorder %s3316_s1, %s3583_s21 }
  0x53   : > { %p3324_p2 = por %p3323_p1, %p3322_p13 }
  0x54   : > { %p3320_p11 = pneg %p3319_p5 }
  0x55   : > { %p3326_p3 = por %p3325_p0, %p3324_p2 }
  0x57   : > { %p3327_p7 = pnand %p3326_p3, %p3320_p11 }
  0x59   : > { %3330 = shalt.err (!%p3327_p7)
}
  0x5a   : > { %s3331_s11 = scalar_lea.vmem %s3585_s24, 8192  ;;  %s3407_s23 = smov [#allocation7]  }
  0x5b   : > { %p3332_p10 = scmp.ne.s32.totalorder %s3585_s24, %s3331_s11  ;;  %s3336_s5 = sshll.u32 %s3407_s23, 4  ;;  %s3337_s5 = int_to_ptr.vmem [resolvable:$false] %s3336_s5 }
  0x5c   : > { %s3338_s7 = scalar_lea.vmem %s3337_s5, 16384  ;;  %p3339_p4 = scmp.lt.s32.totalorder %s3585_s24, %s3337_s5 }
  0x5d   : > { %p3334_p6 = pnand %p3332_p10, %p3512_p12  ;;  %p3340_p5 = scmp.lt.s32.totalorder %s3338_s7, %s3331_s11 }
  0x5f   : > { %p3335_p8 = pneg %p3334_p6  ;;  %p3341_p13 = por %p3340_p5, %p3339_p4 }
  0x61   : > { %p3342_p1 = pnand %p3341_p13, %p3335_p8 }
  0x63   : > { %3345 = shalt.err (!%p3342_p1)
}
  0x64   : > { %s3408_s1 = smov 128   ;;  %s3409_s30 = smov 8  }
  0x65   : > { %2814 = dma.hbm_to_vmem [thread:$0]  (!%p3489_p9), %s3583_s21, 8192, %s3585_s24, %s3506_s13, %s3408_s1, %s3408_s1, %s3409_s30  }
  0x66   : > { %p3975_p12 = scmp.ne.s32.totalorder %s3973_s14, 0 }
  0x67   : > { %s3612_s15 = sand.u32 (!%p3975_p12), 1, %s3384_s16   ;;  %p3976_p11 = scmp.ne.s32.totalorder (!%p3975_p12), %s3969_s25, 0 }
  0x68   : > { %257 = sbr.rel (%p3975_p12) target bundleno = 883 (0x373), region = 36  ;;  %s260_s29 = scalar_lea.sflag (!%p3975_p12), [#allocation4], %s3612_s15 }
  0x69   : > { %s2798_s10 = smul.u32 (!%p3975_p12), 1536, %s3612_s15 }
  0x6b   : > { %s3616_s6 = scalar_lea.vmem (!%p3975_p12), [#allocation3], %s2798_s10 }
  0x6f   : > { %3371 = dma.done.wait (%p3976_p11), %s260_s29, 24576  }
  0x70   : > { %3373 = vsyncadd (%p3976_p11), %s260_s29, 4294942720  ;;  %s3977_s21 = sadd.s32 4294967295, %s3400_s20   ;;  %s2511_s13 = sshll.u32 %s3612_s15, 2 }
  0x71   : > { %s268_s28 = sand.u32 1, %s3977_s21   ;;  %s3625_s24 = scalar_lea.vmem [#allocation5], %s2511_s13 }
  0x72   : > { %s269_s14 = scalar_lea.sflag [#allocation6], %s268_s28 }
  0x73   : > { %3375 = dma.done.wait (%p3976_p11), %s269_s14, 8256  }
  0x74   : > { %3377 = vsyncadd (%p3976_p11), %s269_s14, 4294959040  ;;  %v2871_v0 = vld [vmem:[%s3616_s6 + $0x4] ss:$16 sps:$4 sm:$0xff]   ;;  %v2875_v2 = vld [vmem:[%s3616_s6] ss:$16 sps:$4 sm:$0xff]   ;;  %v538_v38 = vlaneseq  ;;  %s2512_s12 = sshll.u32 %s3612_s15, 9 }
  0x75   : > { %v2873_v1 = vld [vmem:[%s3616_s6 + $0x204] ss:$16 sps:$4 sm:$0xff]   ;;  %1547 = vmatprep.subr.bf16.mxu1 %v2871_v0  ;;  %v2876_v3 = vld [vmem:[%s3616_s6 + $0x200] ss:$16 sps:$4 sm:$0xff]   ;;  %v3410_v36 = vmov 1966171168  }
  0x76   : > { %1588 = vmatprep.subr.bf16.mxu0 %v2873_v1  ;;  %v2877_v4 = vld [vmem:[%s3616_s6 + $0x24] ss:$16 sps:$4 sm:$0xff]   ;;  %1548 = vmatpush1.bf16.msra.mxu1 %v2875_v2  ;;  %v2881_v6 = vld [vmem:[%s3616_s6 + $0x20] ss:$16 sps:$4 sm:$0xff]   ;;  %v536_v37 = vunpack.c.l.s4 %v3410_v36  ;;  %v3670_v43 = vshrl.u32 %v538_v38, 7  ;;  %s3844_s8 = scalar_lea.vmem [#allocation7], %s2512_s12 }
  0x77   : > { %1589 = vmatpush1.bf16.msra.mxu0 %v2876_v3  ;;  %v2879_v5 = vld [vmem:[%s3616_s6 + $0x224] ss:$16 sps:$4 sm:$0xff]   ;;  %1549 = vmatprep.subr.bf16.mxu1 %v2877_v4  ;;  %v2882_v7 = vld [vmem:[%s3616_s6 + $0x220] ss:$16 sps:$4 sm:$0xff]   ;;  %p329_p9 = scmp.lt.s32.totalorder %s3392_s18, 1 }
  0x78   : > { %1590 = vmatprep.subr.bf16.mxu0 %v2879_v5  ;;  %v2883_v8 = vld [vmem:[%s3616_s6 + $0x44] ss:$16 sps:$4 sm:$0xff]   ;;  %v2887_v10 = vld [vmem:[%s3616_s6 + $0x40] ss:$16 sps:$4 sm:$0xff]   ;;  %v537_v42 = vunpack.c.0.s8 %v536_v37  ;;  %v2994_v37 = vld [vmem:[%s3616_s6 + $0x88] ss:$16 sps:$4 sm:$0xff]  }
  0x79   : > { %v2885_v9 = vld [vmem:[%s3616_s6 + $0x244] ss:$16 sps:$4 sm:$0xff]   ;;  %v2888_v11 = vld [vmem:[%s3616_s6 + $0x240] ss:$16 sps:$4 sm:$0xff]   ;;  %s3986_s18 = smov (!%p329_p9, %s3392_s18), 1 }
  0x7a   : > { %1550 = vmatpush1.bf16.msra.mxu1 %v2881_v6  ;;  %v2889_v12 = vld [vmem:[%s3616_s6 + $0x64] ss:$16 sps:$4 sm:$0xff]   ;;  %v2893_v14 = vld [vmem:[%s3616_s6 + $0x60] ss:$16 sps:$4 sm:$0xff]   ;;  %v3678_v49 = vsub.s32 %v537_v42, %v3670_v43  ;;  %s2778_s9 = sshll.u32 %s3986_s18, 2 }
  0x7b   : > { %1591 = vmatpush1.bf16.msra.mxu0 %v2882_v7  ;;  %1551 = vmatprep.subr.bf16.mxu1 %v2883_v8  ;;  %v2891_v13 = vld [vmem:[%s3616_s6 + $0x264] ss:$16 sps:$4 sm:$0xff]   ;;  %v2894_v15 = vld [vmem:[%s3616_s6 + $0x260] ss:$16 sps:$4 sm:$0xff]   ;;  %s333_s5 = scalar_lea.vmem %s3965_s4, %s2778_s9 }
  0x7c   : > { %1592 = vmatprep.subr.bf16.mxu0 %v2885_v9  ;;  %v2895_v16 = vld [vmem:[%s3616_s6 + $0x84] ss:$16 sps:$4 sm:$0xff]   ;;  %v2899_v18 = vld [vmem:[%s3616_s6 + $0x80] ss:$16 sps:$4 sm:$0xff]  }
  0x7d   : > { %v2897_v17 = vld [vmem:[%s3616_s6 + $0x284] ss:$16 sps:$4 sm:$0xff]   ;;  %v2900_v19 = vld [vmem:[%s3616_s6 + $0x280] ss:$16 sps:$4 sm:$0xff]  }
  0x7e   : > { %1552 = vmatpush1.bf16.msra.mxu1 %v2887_v10  ;;  %v2901_v20 = vld [vmem:[%s3616_s6 + $0xa4] ss:$16 sps:$4 sm:$0xff]   ;;  %v2905_v22 = vld [vmem:[%s3616_s6 + $0xa0] ss:$16 sps:$4 sm:$0xff]  }
  0x7f   : > { %1593 = vmatpush1.bf16.msra.mxu0 %v2888_v11  ;;  %1553 = vmatprep.subr.bf16.mxu1 %v2889_v12  ;;  %v2903_v21 = vld [vmem:[%s3616_s6 + $0x2a4] ss:$16 sps:$4 sm:$0xff]   ;;  %v2906_v23 = vld [vmem:[%s3616_s6 + $0x2a0] ss:$16 sps:$4 sm:$0xff]  }
  0x80   : > { %1594 = vmatprep.subr.bf16.mxu0 %v2891_v13  ;;  %v2907_v24 = vld [vmem:[%s3616_s6 + $0xc4] ss:$16 sps:$4 sm:$0xff]   ;;  %v2911_v26 = vld [vmem:[%s3616_s6 + $0xc0] ss:$16 sps:$4 sm:$0xff]  }
  0x81   : > { %v2909_v25 = vld [vmem:[%s3616_s6 + $0x2c4] ss:$16 sps:$4 sm:$0xff]   ;;  %v2912_v27 = vld [vmem:[%s3616_s6 + $0x2c0] ss:$16 sps:$4 sm:$0xff]  }
  0x82   : > { %1554 = vmatpush1.bf16.msra.mxu1 %v2893_v14  ;;  %v2913_v28 = vld [vmem:[%s3616_s6 + $0xe4] ss:$16 sps:$4 sm:$0xff]   ;;  %v2917_v30 = vld [vmem:[%s3616_s6 + $0xe0] ss:$16 sps:$4 sm:$0xff]  }
  0x83   : > { %1595 = vmatpush1.bf16.msra.mxu0 %v2894_v15  ;;  %1555 = vmatprep.subr.bf16.mxu1 %v2895_v16  ;;  %v2915_v29 = vld [vmem:[%s3616_s6 + $0x2e4] ss:$16 sps:$4 sm:$0xff]   ;;  %v2918_v31 = vld [vmem:[%s3616_s6 + $0x2e0] ss:$16 sps:$4 sm:$0xff]   ;;  %v2972_v16 = vld [vmem:[%s3616_s6 + $0xc] ss:$16 sps:$4 sm:$0xff]  }
  0x84   : > { %1596 = vmatprep.subr.bf16.mxu0 %v2897_v17  ;;  %v2919_v32 = vld [vmem:[%s3616_s6 + $0x104] ss:$16 sps:$4 sm:$0xff]   ;;  %v2923_v34 = vld [vmem:[%s3616_s6 + $0x100] ss:$16 sps:$4 sm:$0xff]  }
  0x85   : > { %v2921_v33 = vld [vmem:[%s3616_s6 + $0x304] ss:$16 sps:$4 sm:$0xff]   ;;  %v2924_v35 = vld [vmem:[%s3616_s6 + $0x300] ss:$16 sps:$4 sm:$0xff]  }
  0x86   : > { %1556 = vmatpush1.bf16.msra.mxu1 %v2899_v18  ;;  %v2925_v39 = vld [vmem:[%s3616_s6 + $0x124] ss:$16 sps:$4 sm:$0xff]   ;;  %v2929_v41 = vld [vmem:[%s3616_s6 + $0x120] ss:$16 sps:$4 sm:$0xff]  }
  0x87   : > { %1597 = vmatpush1.bf16.msra.mxu0 %v2900_v19  ;;  %1557 = vmatprep.subr.bf16.mxu1 %v2901_v20  ;;  %v2927_v40 = vld [vmem:[%s3616_s6 + $0x324] ss:$16 sps:$4 sm:$0xff]   ;;  %v2930_v44 = vld [vmem:[%s3616_s6 + $0x320] ss:$16 sps:$4 sm:$0xff]   ;;  %v2970_v20 = vld [vmem:[%s3616_s6 + $0x8] ss:$16 sps:$4 sm:$0xff]  }
  0x88   : > { %1598 = vmatprep.subr.bf16.mxu0 %v2903_v21  ;;  %v2931_v45 = vld [vmem:[%s3616_s6 + $0x144] ss:$16 sps:$4 sm:$0xff]   ;;  %v2935_v47 = vld [vmem:[%s3616_s6 + $0x140] ss:$16 sps:$4 sm:$0xff]  }
  0x89   : > { %v2933_v46 = vld [vmem:[%s3616_s6 + $0x344] ss:$16 sps:$4 sm:$0xff]   ;;  %v2936_v48 = vld [vmem:[%s3616_s6 + $0x340] ss:$16 sps:$4 sm:$0xff]  }
  0x8a   : > { %1558 = vmatpush1.bf16.msra.mxu1 %v2905_v22  ;;  %v2937_v50 = vld [vmem:[%s3616_s6 + $0x164] ss:$16 sps:$4 sm:$0xff]   ;;  %v2941_v53 = vld [vmem:[%s3616_s6 + $0x160] ss:$16 sps:$4 sm:$0xff]   ;;  %v2978_v22 = vld [vmem:[%s3616_s6 + $0x2c] ss:$16 sps:$4 sm:$0xff]  }
  0x8b   : > { %1599 = vmatpush1.bf16.msra.mxu0 %v2906_v23  ;;  %1559 = vmatprep.subr.bf16.mxu1 %v2907_v24  ;;  %v2939_v51 = vld [vmem:[%s3616_s6 + $0x364] ss:$16 sps:$4 sm:$0xff]   ;;  %v2942_v56 = vld [vmem:[%s3616_s6 + $0x360] ss:$16 sps:$4 sm:$0xff]  }
  0x8c   : > { %1600 = vmatprep.subr.bf16.mxu0 %v2909_v25  ;;  %v340_v52 = vld [vmem:[%s3961_s0] sm:$0x3f]  ;;  %v2976_v25 = vld [vmem:[%s3616_s6 + $0x28] ss:$16 sps:$4 sm:$0xff]  }
  0x8d   : > { %v541_v54 = vrot.slane %v340_v52, %v3678_v49  ;;  %v534_v55 = vcombine.high %v340_v52, %v340_v52  ;;  %v2943_v57 = vld [vmem:[%s3616_s6 + $0x184] ss:$16 sps:$4 sm:$0xff]   ;;  %v2947_v61 = vld [vmem:[%s3616_s6 + $0x180] ss:$16 sps:$4 sm:$0xff]   ;;  %v3020_v52 = vld [vmem:[%s3616_s6 + $0x10c] ss:$16 sps:$4 sm:$0xff]  }
  0x8e   : > { %1560 = vmatpush1.bf16.msra.mxu1 %v2911_v26  ;;  %v2945_v58 = vld [vmem:[%s3616_s6 + $0x384] ss:$16 sps:$4 sm:$0xff]   ;;  %v2948_v0 = vld [vmem:[%s3616_s6 + $0x380] ss:$16 sps:$4 sm:$0xff]  }
  0x8f   : > { %1601 = vmatpush1.bf16.msra.mxu0 %v2912_v27  ;;  %1561 = vmatprep.subr.bf16.mxu1 %v2913_v28  ;;  %v549_v59 = vcombine.high %v541_v54, %v541_v54  ;;  %v548_v60 = vrot.slane %v534_v55, %v3678_v49  ;;  %v2949_v1 = vld [vmem:[%s3616_s6 + $0x1a4] ss:$16 sps:$4 sm:$0xff]   ;;  %v2953_v4 = vld [vmem:[%s3616_s6 + $0x1a0] ss:$16 sps:$4 sm:$0xff]   ;;  %v3712_v13 = vrot.slane %v541_v54, %v3678_v49  ;;  %v2984_v27 = vld [vmem:[%s3616_s6 + $0x4c] ss:$16 sps:$4 sm:$0xff]  }
  0x90   : > { %1602 = vmatprep.subr.bf16.mxu0 %v2915_v29  ;;  %v2951_v2 = vld [vmem:[%s3616_s6 + $0x3a4] ss:$16 sps:$4 sm:$0xff]   ;;  %v2954_v5 = vld [vmem:[%s3616_s6 + $0x3a0] ss:$16 sps:$4 sm:$0xff]   ;;  %v2982_v29 = vld [vmem:[%s3616_s6 + $0x48] ss:$16 sps:$4 sm:$0xff]  }
  0x91   : > { %v571_v62 = vrot.slane %v549_v59, %v3678_v49  ;;  %v3694_v63 = vrot.slane %v548_v60, %v3678_v49  ;;  %v2955_v6 = vld [vmem:[%s3616_s6 + $0x1c4] ss:$16 sps:$4 sm:$0xff]   ;;  %v2959_v8 = vld [vmem:[%s3616_s6 + $0x1c0] ss:$16 sps:$4 sm:$0xff]   ;;  %v550_v17 = vcombine.high %v548_v60, %v548_v60  ;;  %v3720_v19 = vcombine.high %v3712_v13, %v3712_v13  ;;  %v3018_v54 = vld [vmem:[%s3616_s6 + $0x108] ss:$16 sps:$4 sm:$0xff]  }
  0x92   : > { %1562 = vmatpush1.bf16.msra.mxu1 %v2917_v30  ;;  %v2957_v7 = vld [vmem:[%s3616_s6 + $0x3c4] ss:$16 sps:$4 sm:$0xff]   ;;  %v2960_v9 = vld [vmem:[%s3616_s6 + $0x3c0] ss:$16 sps:$4 sm:$0xff]   ;;  %v3032_v60 = vld [vmem:[%s3616_s6 + $0x14c] ss:$16 sps:$4 sm:$0xff]  }
  0x93   : > { %1603 = vmatpush1.bf16.msra.mxu0 %v2918_v31  ;;  %1563 = vmatprep.subr.bf16.mxu1 %v2919_v32  ;;  %v3699_v3 = vcombine.high %v571_v62, %v571_v62  ;;  %v2961_v10 = vld [vmem:[%s3616_s6 + $0x1e4] ss:$16 sps:$4 sm:$0xff]   ;;  %v2965_v12 = vld [vmem:[%s3616_s6 + $0x1e0] ss:$16 sps:$4 sm:$0xff]   ;;  %v3726_v23 = vrot.slane %v550_v17, %v3678_v49  ;;  %v2990_v31 = vld [vmem:[%s3616_s6 + $0x6c] ss:$16 sps:$4 sm:$0xff]  }
  0x94   : > { %1604 = vmatprep.subr.bf16.mxu0 %v2921_v33  ;;  %1579 = vmatprep.mubr.bf16.mxu1 %v571_v62  ;;  %v2963_v11 = vld [vmem:[%s3616_s6 + $0x3e4] ss:$16 sps:$4 sm:$0xff]   ;;  %v2966_v14 = vld [vmem:[%s3616_s6 + $0x3e0] ss:$16 sps:$4 sm:$0xff]   ;;  %v2988_v33 = vld [vmem:[%s3616_s6 + $0x68] ss:$16 sps:$4 sm:$0xff]  }
  0x95   : > { %1620 = vmatprep.mubr.bf16.mxu0 %v3699_v3  ;;  %v2969_v15 = vld [vmem:[%s3616_s6 + $0x404] ss:$16 sps:$4 sm:$0xff]   ;;  %v2967_v18 = vld [vmem:[%s3616_s6 + $0x400] ss:$16 sps:$4 sm:$0xff]   ;;  %v3054_v17 = vld [vmem:[%s3616_s6 + $0x1c8] ss:$16 sps:$4 sm:$0xff]  }
  0x96   : > { %1564 = vmatpush1.bf16.msra.mxu1 %v2923_v34  ;;  %v2975_v21 = vld [vmem:[%s3616_s6 + $0x424] ss:$16 sps:$4 sm:$0xff]   ;;  %v2973_v24 = vld [vmem:[%s3616_s6 + $0x420] ss:$16 sps:$4 sm:$0xff]  }
  0x97   : > { %1605 = vmatpush1.bf16.msra.mxu0 %v2924_v35  ;;  %1565 = vmatprep.subr.bf16.mxu1 %v2925_v39  ;;  %v2981_v26 = vld [vmem:[%s3616_s6 + $0x444] ss:$16 sps:$4 sm:$0xff]   ;;  %v2979_v28 = vld [vmem:[%s3616_s6 + $0x440] ss:$16 sps:$4 sm:$0xff]   ;;  %v2996_v35 = vld [vmem:[%s3616_s6 + $0x8c] ss:$16 sps:$4 sm:$0xff]  }
  0x98   : > { %1606 = vmatprep.subr.bf16.mxu0 %v2927_v40  ;;  %v2987_v30 = vld [vmem:[%s3616_s6 + $0x464] ss:$16 sps:$4 sm:$0xff]   ;;  %v2985_v32 = vld [vmem:[%s3616_s6 + $0x460] ss:$16 sps:$4 sm:$0xff]   ;;  %v3002_v39 = vld [vmem:[%s3616_s6 + $0xac] ss:$16 sps:$4 sm:$0xff]  }
  0x99   : > { %v2993_v34 = vld [vmem:[%s3616_s6 + $0x484] ss:$16 sps:$4 sm:$0xff]   ;;  %v2991_v36 = vld [vmem:[%s3616_s6 + $0x480] ss:$16 sps:$4 sm:$0xff]  }
  0x9a   : > { %1566 = vmatpush1.bf16.msra.mxu1 %v2929_v41  ;;  %v2999_v38 = vld [vmem:[%s3616_s6 + $0x4a4] ss:$16 sps:$4 sm:$0xff]   ;;  %v2997_v40 = vld [vmem:[%s3616_s6 + $0x4a0] ss:$16 sps:$4 sm:$0xff]   ;;  %v3000_v41 = vld [vmem:[%s3616_s6 + $0xa8] ss:$16 sps:$4 sm:$0xff]  }
  0x9b   : > { %1607 = vmatpush1.bf16.msra.mxu0 %v2930_v44  ;;  %1567 = vmatprep.subr.bf16.mxu1 %v2931_v45  ;;  %v3005_v42 = vld [vmem:[%s3616_s6 + $0x4c4] ss:$16 sps:$4 sm:$0xff]   ;;  %v3008_v44 = vld [vmem:[%s3616_s6 + $0xcc] ss:$16 sps:$4 sm:$0xff]   ;;  %v3003_v45 = vld [vmem:[%s3616_s6 + $0x4c0] ss:$16 sps:$4 sm:$0xff]  }
  0x9c   : > { %1608 = vmatprep.subr.bf16.mxu0 %v2933_v46  ;;  %v3006_v46 = vld [vmem:[%s3616_s6 + $0xc8] ss:$16 sps:$4 sm:$0xff]   ;;  %v3009_v49 = vld [vmem:[%s3616_s6 + $0x4e0] ss:$16 sps:$4 sm:$0xff]   ;;  %v3023_v55 = vld [vmem:[%s3616_s6 + $0x524] ss:$16 sps:$4 sm:$0xff]  }
  0x9d   : > { %v3029_v59 = vld [vmem:[%s3616_s6 + $0x544] ss:$16 sps:$4 sm:$0xff]  }
  0x9e   : > { %1568 = vmatpush1.bf16.msra.mxu1 %v2935_v47  ;;  %v3011_v47 = vld [vmem:[%s3616_s6 + $0x4e4] ss:$16 sps:$4 sm:$0xff]  }
  0x9f   : > { %1609 = vmatpush1.bf16.msra.mxu0 %v2936_v48  ;;  %1569 = vmatprep.subr.bf16.mxu1 %v2937_v50  ;;  %v3014_v48 = vld [vmem:[%s3616_s6 + $0xec] ss:$16 sps:$4 sm:$0xff]   ;;  %v3012_v50 = vld [vmem:[%s3616_s6 + $0xe8] ss:$16 sps:$4 sm:$0xff]  }
  0xa0   : > { %1610 = vmatprep.subr.bf16.mxu0 %v2939_v51  ;;  %v3017_v51 = vld [vmem:[%s3616_s6 + $0x504] ss:$16 sps:$4 sm:$0xff]  }
  0xa2   : > { %1570 = vmatpush1.bf16.msra.mxu1 %v2941_v53  ;;  %v3015_v53 = vld [vmem:[%s3616_s6 + $0x500] ss:$16 sps:$4 sm:$0xff]  }
  0xa3   : > { %1611 = vmatpush1.bf16.msra.mxu0 %v2942_v56  ;;  %1571 = vmatprep.subr.bf16.mxu1 %v2943_v57  ;;  %v3026_v56 = vld [vmem:[%s3616_s6 + $0x12c] ss:$16 sps:$4 sm:$0xff]   ;;  %v3021_v57 = vld [vmem:[%s3616_s6 + $0x520] ss:$16 sps:$4 sm:$0xff]  }
  0xa4   : > { %1612 = vmatprep.subr.bf16.mxu0 %v2945_v58  ;;  %v3024_v58 = vld [vmem:[%s3616_s6 + $0x128] ss:$16 sps:$4 sm:$0xff]  }
  0xa6   : > { %1572 = vmatpush1.bf16.msra.mxu1 %v2947_v61  ;;  %v3027_v61 = vld [vmem:[%s3616_s6 + $0x540] ss:$16 sps:$4 sm:$0xff]  }
  0xa7   : > { %1613 = vmatpush1.bf16.msra.mxu0 %v2948_v0  ;;  %1573 = vmatprep.subr.bf16.mxu1 %v2949_v1  ;;  %v3035_v0 = vld [vmem:[%s3616_s6 + $0x564] ss:$16 sps:$4 sm:$0xff]   ;;  %v3038_v1 = vld [vmem:[%s3616_s6 + $0x16c] ss:$16 sps:$4 sm:$0xff]  }
  0xa8   : > { %1614 = vmatprep.subr.bf16.mxu0 %v2951_v2  ;;  %v3033_v2 = vld [vmem:[%s3616_s6 + $0x560] ss:$16 sps:$4 sm:$0xff]  }
  0xaa   : > { %1574 = vmatpush1.bf16.msra.mxu1 %v2953_v4  ;;  %v3036_v4 = vld [vmem:[%s3616_s6 + $0x168] ss:$16 sps:$4 sm:$0xff]  }
  0xab   : > { %1615 = vmatpush1.bf16.msra.mxu0 %v2954_v5  ;;  %1575 = vmatprep.subr.bf16.mxu1 %v2955_v6  ;;  %v3041_v5 = vld [vmem:[%s3616_s6 + $0x584] ss:$16 sps:$4 sm:$0xff]   ;;  %v3044_v6 = vld [vmem:[%s3616_s6 + $0x18c] ss:$16 sps:$4 sm:$0xff]  }
  0xac   : > { %1616 = vmatprep.subr.bf16.mxu0 %v2957_v7  ;;  %v3039_v7 = vld [vmem:[%s3616_s6 + $0x580] ss:$16 sps:$4 sm:$0xff]  }
  0xae   : > { %1576 = vmatpush1.bf16.msra.mxu1 %v2959_v8  ;;  %v3042_v8 = vld [vmem:[%s3616_s6 + $0x188] ss:$16 sps:$4 sm:$0xff]  }
  0xaf   : > { %1617 = vmatpush1.bf16.msra.mxu0 %v2960_v9  ;;  %1577 = vmatprep.subr.bf16.mxu1 %v2961_v10  ;;  %v3047_v9 = vld [vmem:[%s3616_s6 + $0x5a4] ss:$16 sps:$4 sm:$0xff]   ;;  %v3050_v10 = vld [vmem:[%s3616_s6 + $0x1ac] ss:$16 sps:$4 sm:$0xff]  }
  0xb0   : > { %1618 = vmatprep.subr.bf16.mxu0 %v2963_v11  ;;  %v3045_v11 = vld [vmem:[%s3616_s6 + $0x5a0] ss:$16 sps:$4 sm:$0xff]  }
  0xb2   : > { %1578 = vmatpush1.bf16.msra.mxu1 %v2965_v12  ;;  %v3048_v12 = vld [vmem:[%s3616_s6 + $0x1a8] ss:$16 sps:$4 sm:$0xff]  }
  0xb3   : > { %1619 = vmatpush1.bf16.msra.mxu0 %v2966_v14  ;;  %1670 = vmatprep.subr.bf16.mxu1 %v2972_v16  ;;  %v3053_v14 = vld [vmem:[%s3616_s6 + $0x5c4] ss:$16 sps:$4 sm:$0xff]   ;;  %v3051_v16 = vld [vmem:[%s3616_s6 + $0x5c0] ss:$16 sps:$4 sm:$0xff]  }
  0xb4   : > { %1629 = vmatprep.subr.bf16.mxu0 %v2969_v15  ;;  %v3056_v15 = vld [vmem:[%s3616_s6 + $0x1cc] ss:$16 sps:$4 sm:$0xff]  }
  0xb5   : > { %1580 = vmatmul.mubr.bf16.vlgmr.msra.gmra.mrb[0].mxu1 %v3712_v13 }
  0xb6   : > { %1621 = vmatmul.mubr.bf16.vlgmr.msra.gmra.mrb[0].mxu0 %v3720_v19  ;;  %1671 = vmatpush1.bf16.msra.mxu1 %v2970_v20  ;;  %v3062_v20 = vld [vmem:[%s3616_s6 + $0x1ec] ss:$16 sps:$4 sm:$0xff]  }
  0xb7   : > { %1630 = vmatpush1.bf16.msra.mxu0 %v2967_v18  ;;  %1672 = vmatprep.subr.bf16.mxu1 %v2978_v22  ;;  %v3059_v18 = vld [vmem:[%s3616_s6 + $0x5e4] ss:$16 sps:$4 sm:$0xff]   ;;  %v3060_v22 = vld [vmem:[%s3616_s6 + $0x1e8] ss:$16 sps:$4 sm:$0xff]  }
  0xb8   : > { %1631 = vmatprep.subr.bf16.mxu0 %v2975_v21  ;;  %1661 = vmatprep.mubr.bf16.mxu0 %v3726_v23  ;;  %v3057_v21 = vld [vmem:[%s3616_s6 + $0x5e0] ss:$16 sps:$4 sm:$0xff]  }
  0xb9   : > { %1702 = vmatprep.mubr.bf16.mxu1 %v571_v62  ;;  %v3030_v62 = vld [vmem:[%s3616_s6 + $0x148] ss:$16 sps:$4 sm:$0xff]  }
  0xba   : > { %1673 = vmatpush1.bf16.msra.mxu1 %v2976_v25  ;;  %v3064_v25 = vld [vmem:[%s3616_s6 + $0x208] ss:$16 sps:$4 sm:$0xff]  }
  0xbb   : > { %1632 = vmatpush1.bf16.msra.mxu0 %v2973_v24  ;;  %1674 = vmatprep.subr.bf16.mxu1 %v2984_v27  ;;  %v3066_v24 = vld [vmem:[%s3616_s6 + $0x20c] ss:$16 sps:$4 sm:$0xff]   ;;  %v3067_v27 = vld [vmem:[%s3616_s6 + $0x228] ss:$16 sps:$4 sm:$0xff]  }
  0xbc   : > { %1633 = vmatprep.subr.bf16.mxu0 %v2981_v26  ;;  %v3069_v26 = vld [vmem:[%s3616_s6 + $0x22c] ss:$16 sps:$4 sm:$0xff]  }
  0xbe   : > { %1675 = vmatpush1.bf16.msra.mxu1 %v2982_v29  ;;  %v3070_v29 = vld [vmem:[%s3616_s6 + $0x248] ss:$16 sps:$4 sm:$0xff]  }
  0xbf   : > { %1634 = vmatpush1.bf16.msra.mxu0 %v2979_v28  ;;  %1676 = vmatprep.subr.bf16.mxu1 %v2990_v31  ;;  %v3072_v28 = vld [vmem:[%s3616_s6 + $0x24c] ss:$16 sps:$4 sm:$0xff]   ;;  %v3073_v31 = vld [vmem:[%s3616_s6 + $0x268] ss:$16 sps:$4 sm:$0xff]  }
  0xc0   : > { %1635 = vmatprep.subr.bf16.mxu0 %v2987_v30  ;;  %v3075_v30 = vld [vmem:[%s3616_s6 + $0x26c] ss:$16 sps:$4 sm:$0xff]  }
  0xc2   : > { %1677 = vmatpush1.bf16.msra.mxu1 %v2988_v33  ;;  %v3079_v33 = vld [vmem:[%s3616_s6 + $0x2a8] ss:$16 sps:$4 sm:$0xff]  }
  0xc3   : > { %1636 = vmatpush1.bf16.msra.mxu0 %v2985_v32  ;;  %1678 = vmatprep.subr.bf16.mxu1 %v2996_v35  ;;  %v3076_v32 = vld [vmem:[%s3616_s6 + $0x288] ss:$16 sps:$4 sm:$0xff]  }
  0xc4   : > { %1637 = vmatprep.subr.bf16.mxu0 %v2993_v34  ;;  %v3084_v34 = vld [vmem:[%s3616_s6 + $0x2cc] ss:$16 sps:$4 sm:$0xff]   ;;  %v3082_v35 = vld [vmem:[%s3616_s6 + $0x2c8] ss:$16 sps:$4 sm:$0xff]  }
  0xc6   : > { %1679 = vmatpush1.bf16.msra.mxu1 %v2994_v37  ;;  %v3085_v37 = vld [vmem:[%s3616_s6 + $0x2e8] ss:$16 sps:$4 sm:$0xff]  }
  0xc7   : > { %1638 = vmatpush1.bf16.msra.mxu0 %v2991_v36  ;;  %1680 = vmatprep.subr.bf16.mxu1 %v3002_v39  ;;  %v3087_v36 = vld [vmem:[%s3616_s6 + $0x2ec] ss:$16 sps:$4 sm:$0xff]   ;;  %v3088_v39 = vld [vmem:[%s3616_s6 + $0x308] ss:$16 sps:$4 sm:$0xff]  }
  0xc8   : > { %1639 = vmatprep.subr.bf16.mxu0 %v2999_v38  ;;  %v3090_v38 = vld [vmem:[%s3616_s6 + $0x30c] ss:$16 sps:$4 sm:$0xff]  }
  0xca   : > { %1681 = vmatpush1.bf16.msra.mxu1 %v3000_v41  ;;  %v3091_v41 = vld [vmem:[%s3616_s6 + $0x328] ss:$16 sps:$4 sm:$0xff]  }
  0xcb   : > { %1640 = vmatpush1.bf16.msra.mxu0 %v2997_v40  ;;  %1682 = vmatprep.subr.bf16.mxu1 %v3008_v44  ;;  %v3093_v40 = vld [vmem:[%s3616_s6 + $0x32c] ss:$16 sps:$4 sm:$0xff]   ;;  %v3094_v44 = vld [vmem:[%s3616_s6 + $0x348] ss:$16 sps:$4 sm:$0xff]  }
  0xcc   : > { %1641 = vmatprep.subr.bf16.mxu0 %v3005_v42  ;;  %v3096_v42 = vld [vmem:[%s3616_s6 + $0x34c] ss:$16 sps:$4 sm:$0xff]  }
  0xce   : > { %1683 = vmatpush1.bf16.msra.mxu1 %v3006_v46  ;;  %v3097_v46 = vld [vmem:[%s3616_s6 + $0x368] ss:$16 sps:$4 sm:$0xff]  }
  0xcf   : > { %1642 = vmatpush1.bf16.msra.mxu0 %v3003_v45  ;;  %1684 = vmatprep.subr.bf16.mxu1 %v3014_v48  ;;  %v3099_v45 = vld [vmem:[%s3616_s6 + $0x36c] ss:$16 sps:$4 sm:$0xff]   ;;  %v3100_v48 = vld [vmem:[%s3616_s6 + $0x388] ss:$16 sps:$4 sm:$0xff]  }
  0xd0   : > { %1643 = vmatprep.subr.bf16.mxu0 %v3011_v47  ;;  %v3102_v47 = vld [vmem:[%s3616_s6 + $0x38c] ss:$16 sps:$4 sm:$0xff]  }
  0xd2   : > { %1685 = vmatpush1.bf16.msra.mxu1 %v3012_v50  ;;  %v3103_v50 = vld [vmem:[%s3616_s6 + $0x3a8] ss:$16 sps:$4 sm:$0xff]  }
  0xd3   : > { %1644 = vmatpush1.bf16.msra.mxu0 %v3009_v49  ;;  %1686 = vmatprep.subr.bf16.mxu1 %v3020_v52  ;;  %v3105_v49 = vld [vmem:[%s3616_s6 + $0x3ac] ss:$16 sps:$4 sm:$0xff]   ;;  %v3106_v52 = vld [vmem:[%s3616_s6 + $0x3c8] ss:$16 sps:$4 sm:$0xff]  }
  0xd4   : > { %1645 = vmatprep.subr.bf16.mxu0 %v3017_v51  ;;  %v3108_v51 = vld [vmem:[%s3616_s6 + $0x3cc] ss:$16 sps:$4 sm:$0xff]  }
  0xd6   : > { %1687 = vmatpush1.bf16.msra.mxu1 %v3018_v54  ;;  %v3109_v54 = vld [vmem:[%s3616_s6 + $0x3e8] ss:$16 sps:$4 sm:$0xff]  }
  0xd7   : > { %1646 = vmatpush1.bf16.msra.mxu0 %v3015_v53  ;;  %1688 = vmatprep.subr.bf16.mxu1 %v3026_v56  ;;  %v3111_v53 = vld [vmem:[%s3616_s6 + $0x3ec] ss:$16 sps:$4 sm:$0xff]   ;;  %v3112_v56 = vld [vmem:[%s3616_s6 + $0x408] ss:$16 sps:$4 sm:$0xff]  }
  0xd8   : > { %1647 = vmatprep.subr.bf16.mxu0 %v3023_v55  ;;  %v3114_v55 = vld [vmem:[%s3616_s6 + $0x40c] ss:$16 sps:$4 sm:$0xff]  }
  0xda   : > { %1689 = vmatpush1.bf16.msra.mxu1 %v3024_v58  ;;  %v3115_v58 = vld [vmem:[%s3616_s6 + $0x428] ss:$16 sps:$4 sm:$0xff]  }
  0xdb   : > { %1648 = vmatpush1.bf16.msra.mxu0 %v3021_v57  ;;  %1690 = vmatprep.subr.bf16.mxu1 %v3032_v60  ;;  %v3117_v57 = vld [vmem:[%s3616_s6 + $0x42c] ss:$16 sps:$4 sm:$0xff]   ;;  %v3118_v60 = vld [vmem:[%s3616_s6 + $0x448] ss:$16 sps:$4 sm:$0xff]  }
  0xdc   : > { %1649 = vmatprep.subr.bf16.mxu0 %v3029_v59  ;;  %v3120_v59 = vld [vmem:[%s3616_s6 + $0x44c] ss:$16 sps:$4 sm:$0xff]  }
  0xde   : > { %1691 = vmatpush1.bf16.msra.mxu1 %v3030_v62  ;;  %v3121_v62 = vld [vmem:[%s3616_s6 + $0x468] ss:$16 sps:$4 sm:$0xff]  }
  0xdf   : > { %1650 = vmatpush1.bf16.msra.mxu0 %v3027_v61  ;;  %1692 = vmatprep.subr.bf16.mxu1 %v3038_v1  ;;  %v3123_v61 = vld [vmem:[%s3616_s6 + $0x46c] ss:$16 sps:$4 sm:$0xff]   ;;  %v3127_v1 = vld [vmem:[%s3616_s6 + $0x4a8] ss:$16 sps:$4 sm:$0xff]  }
  0xe0   : > { %1651 = vmatprep.subr.bf16.mxu0 %v3035_v0  ;;  %v3124_v0 = vld [vmem:[%s3616_s6 + $0x488] ss:$16 sps:$4 sm:$0xff]  }
  0xe2   : > { %1693 = vmatpush1.bf16.msra.mxu1 %v3036_v4  ;;  %v3130_v4 = vld [vmem:[%s3616_s6 + $0x4c8] ss:$16 sps:$4 sm:$0xff]  }
  0xe3   : > { %1652 = vmatpush1.bf16.msra.mxu0 %v3033_v2  ;;  %1694 = vmatprep.subr.bf16.mxu1 %v3044_v6  ;;  %v3132_v2 = vld [vmem:[%s3616_s6 + $0x4cc] ss:$16 sps:$4 sm:$0xff]   ;;  %v3133_v6 = vld [vmem:[%s3616_s6 + $0x4e8] ss:$16 sps:$4 sm:$0xff]  }
  0xe4   : > { %1653 = vmatprep.subr.bf16.mxu0 %v3041_v5  ;;  %v3135_v5 = vld [vmem:[%s3616_s6 + $0x4ec] ss:$16 sps:$4 sm:$0xff]  }
  0xe6   : > { %1695 = vmatpush1.bf16.msra.mxu1 %v3042_v8  ;;  %v3160_v8 = vld [vmem:[%s3844_s8] ss:$8 sps:$4 sm:$0xff]  }
  0xe7   : > { %1654 = vmatpush1.bf16.msra.mxu0 %v3039_v7  ;;  %1696 = vmatprep.subr.bf16.mxu1 %v3050_v10  ;;  %v3138_v7 = vld [vmem:[%s3616_s6 + $0x50c] ss:$16 sps:$4 sm:$0xff]   ;;  %v3136_v10 = vld [vmem:[%s3616_s6 + $0x508] ss:$16 sps:$4 sm:$0xff]  }
  0xe8   : > { %1655 = vmatprep.subr.bf16.mxu0 %v3047_v9  ;;  %v3162_v9 = vld [vmem:[%s3844_s8 + $0x4] ss:$8 sps:$4 sm:$0xff]  }
  0xea   : > { %1697 = vmatpush1.bf16.msra.mxu1 %v3048_v12  ;;  %v3141_v12 = vld [vmem:[%s3616_s6 + $0x52c] ss:$16 sps:$4 sm:$0xff]  }
  0xeb   : > { %1656 = vmatpush1.bf16.msra.mxu0 %v3045_v11  ;;  %1698 = vmatprep.subr.bf16.mxu1 %v3056_v15  ;;  %v3165_v11 = vld [vmem:[%s3844_s8 + $0x14] ss:$8 sps:$4 sm:$0xff]   ;;  %v3168_v15 = vld [vmem:[%s3844_s8 + $0x24] ss:$8 sps:$4 sm:$0xff]  }
  0xec   : > { %1657 = vmatprep.subr.bf16.mxu0 %v3053_v14  ;;  %v3163_v14 = vld [vmem:[%s3844_s8 + $0x10] ss:$8 sps:$4 sm:$0xff]  }
  0xee   : > { %1699 = vmatpush1.bf16.msra.mxu1 %v3054_v17  ;;  %v3144_v17 = vld [vmem:[%s3616_s6 + $0x54c] ss:$16 sps:$4 sm:$0xff]  }
  0xef   : > { %1658 = vmatpush1.bf16.msra.mxu0 %v3051_v16  ;;  %1700 = vmatprep.subr.bf16.mxu1 %v3062_v20  ;;  %v3139_v16 = vld [vmem:[%s3616_s6 + $0x528] ss:$16 sps:$4 sm:$0xff]   ;;  %v3171_v20 = vld [vmem:[%s3844_s8 + $0x34] ss:$8 sps:$4 sm:$0xff]  }
  0xf0   : > { %1659 = vmatprep.subr.bf16.mxu0 %v3059_v18  ;;  %v3166_v18 = vld [vmem:[%s3844_s8 + $0x20] ss:$8 sps:$4 sm:$0xff]  }
  0xf2   : > { %1701 = vmatpush1.bf16.msra.mxu1 %v3060_v22  ;;  %v3147_v22 = vld [vmem:[%s3616_s6 + $0x56c] ss:$16 sps:$4 sm:$0xff]  }
  0xf3   : > { %1660 = vmatpush1.bf16.msra.mxu0 %v3057_v21  ;;  %1711 = vmatprep.subr.bf16.mxu1 %v3066_v24  ;;  %v3142_v21 = vld [vmem:[%s3616_s6 + $0x548] ss:$16 sps:$4 sm:$0xff]  }
  0xf4   : > { %2269 = vmatprep.subr.bf16.mxu0 %v3162_v9  ;;  %v3169_v24 = vld [vmem:[%s3844_s8 + $0x30] ss:$8 sps:$4 sm:$0xff]   ;;  %v3411_v9 = vmov 1983009808  }
  0xf5   : > { %1703 = vmatmul.mubr.bf16.vlgmr.msra.gmra.mrb[4].mxu1 %v3712_v13  ;;  %v3078_v13 = vld [vmem:[%s3616_s6 + $0x28c] ss:$16 sps:$4 sm:$0xff]  }
  0xf6   : > { %1662 = vmatmul.mubr.bf16.vlgmr.msra.gmra.mrb[0].mxu0 %v3694_v63  ;;  %1712 = vmatpush1.bf16.msra.mxu1 %v3064_v25  ;;  %v3174_v25 = vld [vmem:[%s3844_s8 + $0x44] ss:$8 sps:$4 sm:$0xff]  }
  0xf7   : > { %1743 = vmatprep.mubr.bf16.mxu1 %v3699_v3  ;;  %1713 = vmatprep.subr.bf16.mxu1 %v3069_v26  ;;  %v3081_v3 = vld [vmem:[%s3616_s6 + $0x2ac] ss:$16 sps:$4 sm:$0xff]   ;;  %v3145_v26 = vld [vmem:[%s3616_s6 + $0x568] ss:$16 sps:$4 sm:$0xff]  }
  0xf8   : > { %2270 = vmatpush1.bf16.msra.mxu0 %v3160_v8  ;;  %v1821_v8 = vld [vmem:[%s3625_s24] sm:$0xf] }
  0xf9   : > { %2271 = vmatprep.subr.bf16.mxu0 %v3165_v11 }
  0xfa   : > { %1714 = vmatpush1.bf16.msra.mxu1 %v3067_v27  ;;  %v3150_v27 = vld [vmem:[%s3616_s6 + $0x58c] ss:$16 sps:$4 sm:$0xff]  }
  0xfb   : > { %1715 = vmatprep.subr.bf16.mxu1 %v3072_v28  ;;  %v3172_v28 = vld [vmem:[%s3844_s8 + $0x40] ss:$8 sps:$4 sm:$0xff]  }
  0xfc   : > { %2272 = vmatpush1.bf16.msra.mxu0 %v3163_v14 }
  0xfd   : > { %2273 = vmatprep.subr.bf16.mxu0 %v3168_v15 }
  0xfe   : > { %1716 = vmatpush1.bf16.msra.mxu1 %v3070_v29  ;;  %v3177_v29 = vld [vmem:[%s3844_s8 + $0x54] ss:$8 sps:$4 sm:$0xff]  }
  0xff   : > { %1717 = vmatprep.subr.bf16.mxu1 %v3075_v30  ;;  %v3148_v30 = vld [vmem:[%s3616_s6 + $0x588] ss:$16 sps:$4 sm:$0xff]  }
 0x100   : > { %2274 = vmatpush1.bf16.msra.mxu0 %v3166_v18 }
 0x101   : > { %2275 = vmatprep.subr.bf16.mxu0 %v3171_v20 }
 0x102   : > { %1718 = vmatpush1.bf16.msra.mxu1 %v3073_v31  ;;  %v3153_v31 = vld [vmem:[%s3616_s6 + $0x5ac] ss:$16 sps:$4 sm:$0xff]  }
 0x103   : > { %1719 = vmatprep.subr.bf16.mxu1 %v3078_v13  ;;  %v3175_v13 = vld [vmem:[%s3844_s8 + $0x50] ss:$8 sps:$4 sm:$0xff]  }
 0x104   : > { %2276 = vmatpush1.bf16.msra.mxu0 %v3169_v24 }
 0x105   : > { %2277 = vmatprep.subr.bf16.mxu0 %v3174_v25 }
 0x106   : > { %1720 = vmatpush1.bf16.msra.mxu1 %v3076_v32  ;;  %v3180_v32 = vld [vmem:[%s3844_s8 + $0x64] ss:$8 sps:$4 sm:$0xff]  }
 0x107   : > { %1721 = vmatprep.subr.bf16.mxu1 %v3081_v3  ;;  %v3151_v3 = vld [vmem:[%s3616_s6 + $0x5a8] ss:$16 sps:$4 sm:$0xff]  }
 0x108   : > { %2278 = vmatpush1.bf16.msra.mxu0 %v3172_v28 }
 0x109   : > { %2279 = vmatprep.subr.bf16.mxu0 %v3177_v29 }
 0x10a   : > { %1722 = vmatpush1.bf16.msra.mxu1 %v3079_v33  ;;  %v3156_v33 = vld [vmem:[%s3616_s6 + $0x5cc] ss:$16 sps:$4 sm:$0xff]  }
 0x10b   : > { %1723 = vmatprep.subr.bf16.mxu1 %v3084_v34  ;;  %v3178_v34 = vld [vmem:[%s3844_s8 + $0x60] ss:$8 sps:$4 sm:$0xff]  }
 0x10c   : > { %2280 = vmatpush1.bf16.msra.mxu0 %v3175_v13 }
 0x10d   : > { %2281 = vmatprep.subr.bf16.mxu0 %v3180_v32 }
 0x10e   : > { %1724 = vmatpush1.bf16.msra.mxu1 %v3082_v35  ;;  %v3183_v35 = vld [vmem:[%s3844_s8 + $0x74] ss:$8 sps:$4 sm:$0xff]  }
 0x10f   : > { %1725 = vmatprep.subr.bf16.mxu1 %v3087_v36  ;;  %v3154_v36 = vld [vmem:[%s3616_s6 + $0x5c8] ss:$16 sps:$4 sm:$0xff]  }
 0x110   : > { %2282 = vmatpush1.bf16.msra.mxu0 %v3178_v34 }
 0x111   : > { %2283 = vmatprep.subr.bf16.mxu0 %v3183_v35 }
 0x112   : > { %1726 = vmatpush1.bf16.msra.mxu1 %v3085_v37  ;;  %v3159_v37 = vld [vmem:[%s3616_s6 + $0x5ec] ss:$16 sps:$4 sm:$0xff]  }
 0x113   : > { %1727 = vmatprep.subr.bf16.mxu1 %v3090_v38  ;;  %v3181_v38 = vld [vmem:[%s3844_s8 + $0x70] ss:$8 sps:$4 sm:$0xff]  }
 0x114   : > { %2284 = vmatpush1.bf16.msra.mxu0 %v3181_v38 }
 0x116   : > { %1728 = vmatpush1.bf16.msra.mxu1 %v3088_v39  ;;  %v3186_v39 = vld [vmem:[%s3844_s8 + $0x84] ss:$8 sps:$4 sm:$0xff]  }
 0x117   : > { %1729 = vmatprep.subr.bf16.mxu1 %v3093_v40  ;;  %v3157_v40 = vld [vmem:[%s3616_s6 + $0x5e8] ss:$16 sps:$4 sm:$0xff]   ;;  %2285 = vmatprep.subr.bf16.mxu0 %v3186_v39 }
 0x11a   : > { %1730 = vmatpush1.bf16.msra.mxu1 %v3091_v41  ;;  %v3184_v41 = vld [vmem:[%s3844_s8 + $0x80] ss:$8 sps:$4 sm:$0xff]  }
 0x11b   : > { %1731 = vmatprep.subr.bf16.mxu1 %v3096_v42  ;;  %v3189_v42 = vld [vmem:[%s3844_s8 + $0x94] ss:$8 sps:$4 sm:$0xff]   ;;  %2286 = vmatpush1.bf16.msra.mxu0 %v3184_v41 }
 0x11c   : > { %2287 = vmatprep.subr.bf16.mxu0 %v3189_v42  ;;  %v3211_v42 = vld [vmem:[%s3844_s8 + $0x110] ss:$8 sps:$4 sm:$0xff]  }
 0x11e   : > { %1732 = vmatpush1.bf16.msra.mxu1 %v3094_v44  ;;  %v3187_v44 = vld [vmem:[%s3844_s8 + $0x90] ss:$8 sps:$4 sm:$0xff]  }
 0x11f   : > { %1733 = vmatprep.subr.bf16.mxu1 %v3099_v45  ;;  %v3192_v45 = vld [vmem:[%s3844_s8 + $0xa4] ss:$8 sps:$4 sm:$0xff]   ;;  %2288 = vmatpush1.bf16.msra.mxu0 %v3187_v44 }
 0x120   : > { %2289 = vmatprep.subr.bf16.mxu0 %v3192_v45  ;;  %v3216_v44 = vld [vmem:[%s3844_s8 + $0x124] ss:$8 sps:$4 sm:$0xff]   ;;  %v3214_v45 = vld [vmem:[%s3844_s8 + $0x120] ss:$8 sps:$4 sm:$0xff]  }
 0x122   : > { %1734 = vmatpush1.bf16.msra.mxu1 %v3097_v46  ;;  %v3190_v46 = vld [vmem:[%s3844_s8 + $0xa0] ss:$8 sps:$4 sm:$0xff]  }
 0x123   : > { %1735 = vmatprep.subr.bf16.mxu1 %v3102_v47  ;;  %v3195_v47 = vld [vmem:[%s3844_s8 + $0xb4] ss:$8 sps:$4 sm:$0xff]   ;;  %2290 = vmatpush1.bf16.msra.mxu0 %v3190_v46 }
 0x124   : > { %2291 = vmatprep.subr.bf16.mxu0 %v3195_v47  ;;  %v3219_v46 = vld [vmem:[%s3844_s8 + $0x134] ss:$8 sps:$4 sm:$0xff]   ;;  %v3217_v47 = vld [vmem:[%s3844_s8 + $0x130] ss:$8 sps:$4 sm:$0xff]  }
 0x126   : > { %1736 = vmatpush1.bf16.msra.mxu1 %v3100_v48  ;;  %v3193_v48 = vld [vmem:[%s3844_s8 + $0xb0] ss:$8 sps:$4 sm:$0xff]  }
 0x127   : > { %1737 = vmatprep.subr.bf16.mxu1 %v3105_v49  ;;  %2292 = vmatpush1.bf16.msra.mxu0 %v3193_v48  ;;  %v3222_v48 = vld [vmem:[%s3844_s8 + $0x144] ss:$8 sps:$4 sm:$0xff]  }
 0x12a   : > { %1738 = vmatpush1.bf16.msra.mxu1 %v3103_v50 }
 0x12b   : > { %1739 = vmatprep.subr.bf16.mxu1 %v3108_v51 }
 0x12e   : > { %1740 = vmatpush1.bf16.msra.mxu1 %v3106_v52 }
 0x12f   : > { %1741 = vmatprep.subr.bf16.mxu1 %v3111_v53  ;;  %v3198_v53 = vld [vmem:[%s3844_s8 + $0xc4] ss:$8 sps:$4 sm:$0xff]  }
 0x130   : > { %2293 = vmatprep.subr.bf16.mxu0 %v3198_v53  ;;  %v3231_v53 = vld [vmem:[%s3844_s8 + $0x174] ss:$8 sps:$4 sm:$0xff]  }
 0x132   : > { %1742 = vmatpush1.bf16.msra.mxu1 %v3109_v54 }
 0x133   : > { %1752 = vmatprep.subr.bf16.mxu1 %v3114_v55 }
 0x135   : > { %1744 = vmatmul.mubr.bf16.vlgmr.msra.gmra.mrb[4].mxu1 %v3720_v19  ;;  %v3126_v19 = vld [vmem:[%s3616_s6 + $0x48c] ss:$16 sps:$4 sm:$0xff]  }
 0x136   : > { %1753 = vmatpush1.bf16.msra.mxu1 %v3112_v56  ;;  %1784 = vmatprep.mubr.bf16.mxu1 %v3726_v23  ;;  %v3129_v23 = vld [vmem:[%s3616_s6 + $0x4ac] ss:$16 sps:$4 sm:$0xff]   ;;  %v3196_v56 = vld [vmem:[%s3844_s8 + $0xc0] ss:$8 sps:$4 sm:$0xff]  }
 0x137   : > { %1754 = vmatprep.subr.bf16.mxu1 %v3117_v57  ;;  %2294 = vmatpush1.bf16.msra.mxu0 %v3196_v56  ;;  %v3232_v56 = vld [vmem:[%s3844_s8 + $0x180] ss:$8 sps:$4 sm:$0xff]  }
 0x13a   : > { %1755 = vmatpush1.bf16.msra.mxu1 %v3115_v58 }
 0x13b   : > { %1756 = vmatprep.subr.bf16.mxu1 %v3120_v59 }
 0x13e   : > { %1757 = vmatpush1.bf16.msra.mxu1 %v3118_v60 }
 0x13f   : > { %1758 = vmatprep.subr.bf16.mxu1 %v3123_v61  ;;  %v3201_v61 = vld [vmem:[%s3844_s8 + $0xd4] ss:$8 sps:$4 sm:$0xff]  }
 0x140   : > { %2295 = vmatprep.subr.bf16.mxu0 %v3201_v61  ;;  %v3243_v61 = vld [vmem:[%s3844_s8 + $0x1b4] ss:$8 sps:$4 sm:$0xff]  }
 0x142   : > { %1759 = vmatpush1.bf16.msra.mxu1 %v3121_v62  ;;  %v3199_v62 = vld [vmem:[%s3844_s8 + $0xd0] ss:$8 sps:$4 sm:$0xff]  }
 0x143   : > { %1760 = vmatprep.subr.bf16.mxu1 %v3126_v19  ;;  %2296 = vmatpush1.bf16.msra.mxu0 %v3199_v62  ;;  %v3204_v19 = vld [vmem:[%s3844_s8 + $0xe4] ss:$8 sps:$4 sm:$0xff]   ;;  %v3241_v62 = vld [vmem:[%s3844_s8 + $0x1b0] ss:$8 sps:$4 sm:$0xff]  }
 0x144   : > { %2297 = vmatprep.subr.bf16.mxu0 %v3204_v19  ;;  %v3246_v19 = vld [vmem:[%s3844_s8 + $0x1c4] ss:$8 sps:$4 sm:$0xff]  }
 0x146   : > { %1761 = vmatpush1.bf16.msra.mxu1 %v3124_v0  ;;  %v3202_v0 = vld [vmem:[%s3844_s8 + $0xe0] ss:$8 sps:$4 sm:$0xff]  }
 0x147   : > { %1762 = vmatprep.subr.bf16.mxu1 %v3129_v23  ;;  %v3207_v23 = vld [vmem:[%s3844_s8 + $0xf4] ss:$8 sps:$4 sm:$0xff]   ;;  %2298 = vmatpush1.bf16.msra.mxu0 %v3202_v0  ;;  %v3244_v0 = vld [vmem:[%s3844_s8 + $0x1c0] ss:$8 sps:$4 sm:$0xff]  }
 0x148   : > { %2299 = vmatprep.subr.bf16.mxu0 %v3207_v23  ;;  %v3249_v23 = vld [vmem:[%s3844_s8 + $0x1d4] ss:$8 sps:$4 sm:$0xff]  }
 0x14a   : > { %1763 = vmatpush1.bf16.msra.mxu1 %v3127_v1  ;;  %v3205_v1 = vld [vmem:[%s3844_s8 + $0xf0] ss:$8 sps:$4 sm:$0xff]  }
 0x14b   : > { %1764 = vmatprep.subr.bf16.mxu1 %v3132_v2  ;;  %2300 = vmatpush1.bf16.msra.mxu0 %v3205_v1  ;;  %v3210_v2 = vld [vmem:[%s3844_s8 + $0x104] ss:$8 sps:$4 sm:$0xff]   ;;  %v3247_v1 = vld [vmem:[%s3844_s8 + $0x1d0] ss:$8 sps:$4 sm:$0xff]  }
 0x14c   : > { %2310 = vmatprep.subr.bf16.mxu0 %v3210_v2  ;;  %v3252_v2 = vld [vmem:[%s3844_s8 + $0x1e4] ss:$8 sps:$4 sm:$0xff]  }
 0x14e   : > { %1765 = vmatpush1.bf16.msra.mxu1 %v3130_v4  ;;  %v1825_v4 = vsub.s32 0, %v3670_v43 }
 0x14f   : > { %1766 = vmatprep.subr.bf16.mxu1 %v3135_v5  ;;  %v1829_v5 = vsub.s32 1, %v3670_v43 }
 0x150   : > { %v1826_v11 = vrot.slane %v1821_v8, %v1825_v4  ;;  %v3250_v4 = vld [vmem:[%s3844_s8 + $0x1e0] ss:$8 sps:$4 sm:$0xff]  }
 0x152   : > { %1767 = vmatpush1.bf16.msra.mxu1 %v3133_v6  ;;  %v1833_v6 = vsub.s32 2, %v3670_v43 }
 0x153   : > { %1768 = vmatprep.subr.bf16.mxu1 %v3138_v7  ;;  %v1837_v7 = vsub.s32 3, %v3670_v43 }
 0x154   : > { %v1834_v14 = vrot.slane %v1821_v8, %v1833_v6  ;;  %v3253_v6 = vld [vmem:[%s3844_s8 + $0x1f0] ss:$8 sps:$4 sm:$0xff]  }
 0x155   : > { %v1838_v15 = vrot.slane %v1821_v8, %v1837_v7 }
 0x156   : > { %1769 = vmatpush1.bf16.msra.mxu1 %v3136_v10  ;;  %v1800_v10 = vunpack.c.l.s4 %v3411_v9 }
 0x157   : > { %1770 = vmatprep.subr.bf16.mxu1 %v3141_v12  ;;  %v1830_v12 = vrot.slane %v1821_v8, %v1829_v5  ;;  %v1840_v18 = vcombine.low %v1834_v14, %v1838_v15  ;;  %v3255_v5 = vld [vmem:[%s3844_s8 + $0x1f4] ss:$8 sps:$4 sm:$0xff]  }
 0x15a   : > { %1771 = vmatpush1.bf16.msra.mxu1 %v3139_v16  ;;  %v1801_v16 = vunpack.c.0.s8 %v1800_v10 }
 0x15b   : > { %1772 = vmatprep.subr.bf16.mxu1 %v3144_v17  ;;  %v1839_v17 = vcombine.low %v1826_v11, %v1830_v12 }
 0x15c   : > { %v1804_v20 = vsub.s32 %v1801_v16, %v3670_v43 }
 0x15e   : > { %1773 = vmatpush1.bf16.msra.mxu1 %v3142_v21  ;;  %v1854_v24 = vrot.slane %v1840_v18, %v1804_v20 }
 0x15f   : > { %1774 = vmatprep.subr.bf16.mxu1 %v3147_v22  ;;  %v1847_v22 = vrot.slane %v1839_v17, %v1804_v20 }
 0x162   : > { %1775 = vmatpush1.bf16.msra.mxu1 %v3145_v26 }
 0x163   : > { %1776 = vmatprep.subr.bf16.mxu1 %v3150_v27 }
 0x166   : > { %1777 = vmatpush1.bf16.msra.mxu1 %v3148_v30 }
 0x167   : > { %1778 = vmatprep.subr.bf16.mxu1 %v3153_v31  ;;  %v1855_v31 = vcombine.low %v1847_v22, %v1854_v24 }
 0x16a   : > { %1779 = vmatpush1.bf16.msra.mxu1 %v3151_v3 }
 0x16b   : > { %1780 = vmatprep.subr.bf16.mxu1 %v3156_v33 }
 0x16e   : > { %1781 = vmatpush1.bf16.msra.mxu1 %v3154_v36 }
 0x16f   : > { %1782 = vmatprep.subr.bf16.mxu1 %v3159_v37  ;;  %v3208_v37 = vld [vmem:[%s3844_s8 + $0x100] ss:$8 sps:$4 sm:$0xff]  }
 0x172   : > { %1783 = vmatpush1.bf16.msra.mxu1 %v3157_v40  ;;  %v3213_v40 = vld [vmem:[%s3844_s8 + $0x114] ss:$8 sps:$4 sm:$0xff]  }
 0x175   : > { %1785 = vmatmul.mubr.bf16.vlgmr.msra.gmra.mrb[4].mxu1 %v3694_v63 }
 0x188   : > { %v1581_v49 = vpop.f32.mrb[0].mxu1 }
 0x189   : > { %v1583_v50 = vpop.f32.mrb[1].mxu1 }
 0x18a   : > { %v1585_v51 = vpop.f32.mrb[2].mxu1 }
 0x18b   : > { %v1586_v52 = vpop.f32.mrb[3].mxu1  ;;  %v3223_v51 = vld [vmem:[%s3844_s8 + $0x150] ss:$8 sps:$4 sm:$0xff]  }
 0x18c   : > { %v3228_v52 = vld [vmem:[%s3844_s8 + $0x164] ss:$8 sps:$4 sm:$0xff]  }
 0x1c9   : > { %v1663_v63 = vpop.f32.mrb[0].mxu0 }
 0x1ca   : > { %v2779_v54 = vadd.f32 %v1663_v63, %v1581_v49  ;;  %v1665_v55 = vpop.f32.mrb[1].mxu0  ;;  %v3220_v49 = vld [vmem:[%s3844_s8 + $0x140] ss:$8 sps:$4 sm:$0xff]  }
 0x1cb   : > { %v2780_v57 = vadd.f32 %v1665_v55, %v1583_v50  ;;  %v1667_v58 = vpop.f32.mrb[2].mxu0  ;;  %v3225_v50 = vld [vmem:[%s3844_s8 + $0x154] ss:$8 sps:$4 sm:$0xff]   ;;  %v3226_v63 = vld [vmem:[%s3844_s8 + $0x160] ss:$8 sps:$4 sm:$0xff]  }
 0x1cc   : > { %v1668_v59 = vpop.f32.mrb[3].mxu0  ;;  %v3234_v55 = vld [vmem:[%s3844_s8 + $0x184] ss:$8 sps:$4 sm:$0xff]   ;;  %v3235_v58 = vld [vmem:[%s3844_s8 + $0x190] ss:$8 sps:$4 sm:$0xff]  }
 0x1cd   : > { %v1797_v60 = vcombine.low %v2779_v54, %v2780_v57  ;;  %v3229_v54 = vld [vmem:[%s3844_s8 + $0x170] ss:$8 sps:$4 sm:$0xff]   ;;  %v3237_v57 = vld [vmem:[%s3844_s8 + $0x194] ss:$8 sps:$4 sm:$0xff]   ;;  %v3240_v59 = vld [vmem:[%s3844_s8 + $0x1a4] ss:$8 sps:$4 sm:$0xff]  }
 0x1cf   : > { %v1805_v29 = vrot.slane %v1797_v60, %v1804_v20  ;;  %v3238_v60 = vld [vmem:[%s3844_s8 + $0x1a0] ss:$8 sps:$4 sm:$0xff]  }
 0x248   : > { %v1786_v21 = vpop.f32.mrb[4].mxu1 }
 0x249   : > { %v1788_v25 = vpop.f32.mrb[5].mxu1 }
 0x24a   : > { %v1798_v26 = vcombine.low %v1786_v21, %v1788_v25  ;;  %v1790_v27 = vpop.f32.mrb[6].mxu1 }
 0x24b   : > { %v1791_v28 = vpop.f32.mrb[7].mxu1 }
 0x24c   : > { %v1812_v30 = vrot.slane %v1798_v26, %v1804_v20 }
 0x24e   : > { %v1813_v13 = vcombine.low %v1805_v29, %v1812_v30 }
 0x250   : > { %v1857_v32 = vadd.f32 %v1855_v31, %v1813_v13 }
 0x252   : > { %v1858_v3 = vmax.f32 %v1857_v32, 0.0 }
 0x254   : > { %v1867_v33 = vrot.slane %v1858_v3, %v1804_v20  ;;  %v1860_v34 = vcombine.high %v1858_v3, %v1858_v3 }
 0x256   : > { %v1875_v43 = vcombine.high %v1867_v33, %v1867_v33  ;;  %v3901_v35 = vrot.slane %v1860_v34, %v1804_v20  ;;  %v1881_v39 = vpack.c.bf16 %v1867_v33, %v1867_v33 }
 0x258   : > { %v1882_v36 = vpack.c.bf16 %v1875_v43, %v1875_v43  ;;  %v1876_v38 = vcombine.high %v3901_v35, %v3901_v35  ;;  %v1883_v7 = vpack.c.bf16 %v3901_v35, %v3901_v35 }
 0x25a   : > { %2301 = vmatprep.mubr.bf16.mxu0 %v1882_v36  ;;  %v1884_v41 = vpack.c.bf16 %v1876_v38, %v1876_v38 }
 0x25b   : > { %2302 = vmatmul.mubr.bf16.vlgmr.msra.gmra.mrb[4].mxu0 %v1881_v39 }
 0x25c   : > { %2311 = vmatpush1.bf16.msra.mxu0 %v3208_v37  ;;  %2342 = vmatprep.mubr.bf16.mxu0 %v1884_v41 }
 0x25d   : > { %2312 = vmatprep.subr.bf16.mxu0 %v3213_v40 }
 0x260   : > { %2313 = vmatpush1.bf16.msra.mxu0 %v3211_v42 }
 0x261   : > { %2314 = vmatprep.subr.bf16.mxu0 %v3216_v44 }
 0x264   : > { %2315 = vmatpush1.bf16.msra.mxu0 %v3214_v45 }
 0x265   : > { %2316 = vmatprep.subr.bf16.mxu0 %v3219_v46 }
 0x268   : > { %2317 = vmatpush1.bf16.msra.mxu0 %v3217_v47 }
 0x269   : > { %2318 = vmatprep.subr.bf16.mxu0 %v3222_v48 }
 0x26c   : > { %2319 = vmatpush1.bf16.msra.mxu0 %v3220_v49 }
 0x26d   : > { %2320 = vmatprep.subr.bf16.mxu0 %v3225_v50 }
 0x270   : > { %2321 = vmatpush1.bf16.msra.mxu0 %v3223_v51 }
 0x271   : > { %2322 = vmatprep.subr.bf16.mxu0 %v3228_v52 }
 0x274   : > { %2323 = vmatpush1.bf16.msra.mxu0 %v3226_v63 }
 0x275   : > { %2324 = vmatprep.subr.bf16.mxu0 %v3231_v53 }
 0x278   : > { %2325 = vmatpush1.bf16.msra.mxu0 %v3229_v54 }
 0x279   : > { %2326 = vmatprep.subr.bf16.mxu0 %v3234_v55 }
 0x27c   : > { %2327 = vmatpush1.bf16.msra.mxu0 %v3232_v56 }
 0x27d   : > { %2328 = vmatprep.subr.bf16.mxu0 %v3237_v57 }
 0x280   : > { %2329 = vmatpush1.bf16.msra.mxu0 %v3235_v58 }
 0x281   : > { %2330 = vmatprep.subr.bf16.mxu0 %v3240_v59 }
 0x284   : > { %2331 = vmatpush1.bf16.msra.mxu0 %v3238_v60 }
 0x285   : > { %2332 = vmatprep.subr.bf16.mxu0 %v3243_v61 }
 0x288   : > { %2333 = vmatpush1.bf16.msra.mxu0 %v3241_v62 }
 0x289   : > { %2334 = vmatprep.subr.bf16.mxu0 %v3246_v19 }
 0x28c   : > { %2335 = vmatpush1.bf16.msra.mxu0 %v3244_v0 }
 0x28d   : > { %2336 = vmatprep.subr.bf16.mxu0 %v3249_v23 }
 0x290   : > { %2337 = vmatpush1.bf16.msra.mxu0 %v3247_v1 }
 0x291   : > { %2338 = vmatprep.subr.bf16.mxu0 %v3252_v2 }
 0x294   : > { %2339 = vmatpush1.bf16.msra.mxu0 %v3250_v4 }
 0x295   : > { %2340 = vmatprep.subr.bf16.mxu0 %v3255_v5 }
 0x298   : > { %2341 = vmatpush1.bf16.msra.mxu0 %v3253_v6 }
 0x29b   : > { %2343 = vmatmul.mubr.bf16.vlgmr.msra.gmra.mrb[4].mxu0 %v1883_v7 }
 0x36e   : > { %v2344_v8 = vpop.f32.mrb[4].mxu0 }
 0x36f   : > { %v2346_v9 = vpop.f32.mrb[5].mxu0 }
 0x370   : > { %v2353_v10 = vcombine.low %v2344_v8, %v2346_v9  ;;  %v2348_v11 = vpop.f32.mrb[6].mxu0 }
 0x371   : > { %v2349_v12 = vpop.f32.mrb[7].mxu0 }
 0x372   : > { %2771 = vst.sshfl [vmem:[%s333_s5] sm:$0x33 pattern:$0x76325410] %v2353_v10 }
 0x373 PF: > { %s20_s20 = sadd.s32 1, %s3400_s20   ;;  %s3978_s15 = smov %s3384_s16 }
 0x374   : > { %p17_p2 = scmp.ge.s32.totalorder %s20_s20, 4   ;;  %s3979_s16 = smov %s3388_s17 }
 0x375   : > { %s3980_s17 = smov %s3484_s26  ;;  %s3981_s18 = smov %s3396_s19 }
 0x376   : > { %s3982_s19 = smov %s3984_s22  ;;  %19 = sbr.rel (!%p17_p2) target bundleno = 8 (0x8), region = 111 }
 0x37d   :  { %2384 = vsyncpa [#allocation4], 1 }
 0x37e   :  { %2386 = vsyncpa [#allocation4 + $0x1], 1 }
 0x37f   :  { %2387 = vsyncpa [#allocation6], 1 }
 0x380   :  { %2389 = vsyncpa [#allocation6 + $0x1], 1 }

</bundles_post_ra>
